<compile_context>
chip_gen: v6e
topology: v6e:2x2x1
jax: 0.10.0
libtpu: 0.0.40
codegen_flags: <defaults>
</compile_context>

<pallas_src>
import math

import jax
import jax.numpy as jnp
from jax.experimental import pallas as pl
from jax.experimental.pallas import tpu as pltpu

EPS = 1e-5


def _kernel(x_ref, bn1s_ref, bn1b_ref, w1_ref, alpha_ref, w2_ref, bias2_ref,
            sew1_ref, sew2_ref, out_ref, lhs_ref):
    Nb, H, WC = x_ref.shape
    mxu_dt = lhs_ref.dtype

    def conv3x3(y_f32, w_ref):
        # Build the K-folded LHS in VMEM: lane slots [0:WC | WC:2WC | 2WC:3WC]
        # of output row h hold input rows h-1, h, h+1 (zero H-padding at the
        # borders).  Then ONE K=3*WC matmul against the stacked banded weight
        # (which also encodes the W-direction padding / dw shifts).
        yb = y_f32.astype(mxu_dt)
        zrow = jnp.zeros((Nb, 1, WC), mxu_dt)
        lhs_ref[:, 0:1, 0:WC] = zrow                        # h-1 pad at h == 0
        lhs_ref[:, :, WC:2 * WC] = yb                       # center row
        lhs_ref[:, H - 1:H, 2 * WC:3 * WC] = zrow           # h+1 pad at h == H-1
        if H > 1:
            lhs_ref[:, 1:H, 0:WC] = yb[:, 0:H - 1, :]       # shifted down
            lhs_ref[:, 0:H - 1, 2 * WC:3 * WC] = yb[:, 1:H, :]  # shifted up
        lhs = lhs_ref[...].reshape(Nb * H, 3 * WC)
        return jnp.dot(lhs, w_ref[...],
                       preferred_element_type=jnp.float32)  # (Nb*H, WC) f32

    # BatchNorm #1 (pre-folded scale/shift).  x is read here and re-read at the
    # end, so the full f32 x block is not live across both convs.
    y = x_ref[...].astype(jnp.float32) * bn1s_ref[...] + bn1b_ref[...]

    # Conv #1 (3x3, pad=1, no bias) + PReLU (per-channel slope, lane-tiled).
    y = conv3x3(y, w1_ref)
    y = jnp.where(y >= 0, y, alpha_ref[...] * y)
    y = y.reshape(Nb, H, WC)

    # Conv #2 (3x3, pad=1, no bias) with BatchNorm #2 folded into weights+bias.
    y = conv3x3(y, w2_ref) + bias2_ref[...]
    y = y.reshape(Nb, H, WC)

    # SEModule: global avg pool -> 1x1 conv -> ReLU -> 1x1 conv -> sigmoid.
    # se_w1 is lane-tiled to (W*C, Crp) and pre-divided by H*W, se_w2 to
    # (Crp, W*C); both are zero-padded to 128-lane Crp so all MXU pops/stores
    # are full-width.
    rowsum = jnp.sum(y, axis=1)                              # (Nb, W*C)
    s = jnp.maximum(jnp.dot(rowsum, sew1_ref[...],
                            preferred_element_type=jnp.float32), 0.0)
    gate = jax.nn.sigmoid(jnp.dot(s, sew2_ref[...],
                                  preferred_element_type=jnp.float32))
    y = y * gate[:, None, :]

    # Residual shortcut (MaxPool2d(1,1) == identity) + pixel-attention gate.
    x2 = x_ref[...].astype(jnp.float32)
    out_ref[...] = (jax.nn.sigmoid(y + x2) * x2).astype(out_ref.dtype)


def _band_conv_weight(w_hwio, W):
    """(3,3,Ci,Co) HWIO -> (3, W*Ci, W*Co) block-banded matrices.

    BigW[dh][w'*Ci + ci, w*Co + co] = w_hwio[dh, w'-w+1, ci, co] for |w'-w| <= 1
    (zero otherwise), so a 3x3 'same' conv on lane-dense (rows, W*Ci) data is a
    matmul per dh; the band structure encodes the dw shifts and the W-direction
    zero padding.  The caller stacks the 3 dh blocks along K (-> (3*W*Ci, W*Co)).
    """
    KH, KW, Ci, Co = w_hwio.shape
    big = jnp.zeros((KH, W * Ci, W * Co), w_hwio.dtype)
    for w in range(W):
        for dw in range(KW):
            wp = w + dw - 1
            if 0 <= wp < W:
                big = big.at[:, wp * Ci:(wp + 1) * Ci,
                             w * Co:(w + 1) * Co].set(w_hwio[:, dw])
    return big


def pixel_attention_se(x_nhwc, p, *, batch_block=None, mxu_dtype=jnp.bfloat16):
    N, H, W, C = x_nhwc.shape
    WC = W * C
    Cr = p["se_w1"].shape[1]
    Crp = ((Cr + 127) // 128) * 128                          # lane-padded SE width

    # ---- host-side folding / lane-dense tiling of parameters ---------------
    tile_w = lambda v: jnp.tile(v.reshape(1, C), (1, W))     # (1, W*C)

    s1 = p["bn1_g"].reshape(C) * jax.lax.rsqrt(p["bn1_v"].reshape(C) + EPS)
    bn1_scale = tile_w(s1)
    bn1_shift = tile_w(p["bn1_b"].reshape(C) - p["bn1_m"].reshape(C) * s1)
    alpha_t = tile_w(p["alpha"].reshape(C))

    s2 = p["bn2_g"].reshape(C) * jax.lax.rsqrt(p["bn2_v"].reshape(C) + EPS)
    bias2_t = tile_w(p["bn2_b"].reshape(C) - p["bn2_m"].reshape(C) * s2)

    # Stacked (K-folded) banded conv weights, cast to the MXU dtype (bf16 default).
    big_w1 = _band_conv_weight(p["w1"], W).reshape(3 * WC, WC).astype(mxu_dtype)
    big_w2 = (_band_conv_weight(p["w2"] * s2[None, None, None, :], W)  # fold BN2
              .reshape(3 * WC, WC).astype(mxu_dtype))

    # SE weights: lane-tiled, fc1 pre-divided by H*W (avg-pool fold), both
    # zero-padded to a 128-lane reduced dimension (mathematical no-op).
    se_w1_t = jnp.zeros((WC, Crp), jnp.float32).at[:, :Cr].set(
        jnp.tile(p["se_w1"], (W, 1)).astype(jnp.float32) / float(H * W))
    se_w2_t = jnp.zeros((Crp, WC), jnp.float32).at[:Cr, :].set(
        jnp.tile(p["se_w2"], (1, W)).astype(jnp.float32))

    # ---- batching: fill the MXU M dim (Nb*H >= 256) but keep >= 2 grid steps
    # when N >= 2 so v7x megacore + input/output pipelining stay alive. --------
    if batch_block is None:
        batch_block = max(1, min(pl.cdiv(256, H), pl.cdiv(N, 2), N))
    Nb = max(1, batch_block)
    n_blocks = pl.cdiv(N, Nb)
    Npad = n_blocks * Nb

    x_ld = x_nhwc.reshape(N, H, WC)                          # lane-dense view
    if Npad != N:
        x_ld = jnp.concatenate(
            [x_ld, jnp.zeros((Npad - N, H, WC), x_ld.dtype)], axis=0)

    # ---- VMEM budget (auto-pipeline double-buffers in/out and the constant
    # weights); only raise the scoped limit when needed, cap below v7x's 64 MiB.
    mxu_b = jnp.dtype(mxu_dtype).itemsize
    x_b = jnp.dtype(x_nhwc.dtype).itemsize
    vmem_need = (2 * 2 * Nb * H * WC * x_b            # x / out blocks, 2-deep
                 + 2 * 2 * 3 * WC * WC * mxu_b        # conv weights, 2-deep
                 + Nb * H * 3 * WC * mxu_b            # LHS scratch
                 + 2 * 2 * Crp * WC * 4               # SE weights, 2-deep
                 + (2 << 20))                         # vectors + headroom
    vmem_limit = int(min(64 << 20, max(32 << 20, int(1.25 * vmem_need))))

    cspec = lambda shape: pl.BlockSpec(shape, lambda i: (0, 0))
    out_ld = pl.pallas_call(
        _kernel,
        out_shape=jax.ShapeDtypeStruct((Npad, H, WC), x_nhwc.dtype),
        grid=(n_blocks,),
        in_specs=[
            pl.BlockSpec((Nb, H, WC), lambda i: (i, 0, 0)),  # x (lane-dense)
            cspec((1, WC)), cspec((1, WC)),                  # BN1 scale / shift
            cspec((3 * WC, WC)),                             # stacked banded conv1
            cspec((1, WC)),                                  # PReLU alpha
            cspec((3 * WC, WC)),                             # stacked banded conv2 (+BN2)
            cspec((1, WC)),                                  # BN2 folded bias
            cspec((WC, Crp)),                                # SE fc1 (tiled, /HW, padded)
            cspec((Crp, WC)),                                # SE fc2 (tiled, padded)
        ],
        out_specs=pl.BlockSpec((Nb, H, WC), lambda i: (i, 0, 0)),
        scratch_shapes=[pltpu.VMEM((Nb, H, 3 * WC), mxu_dtype)],  # K-folded LHS
        compiler_params=pltpu.CompilerParams(
            dimension_semantics=("parallel",),               # v7x megacore
            vmem_limit_bytes=vmem_limit),
    )(x_ld, bn1_scale, bn1_shift, big_w1, alpha_t, big_w2, bias2_t,
      se_w1_t, se_w2_t)

    return out_ld[:N].reshape(N, H, W, C)


def init_params(key, C):
    """Deterministic synthetic parameters (PyTorch shapes, converted to NHWC layout)."""
    Cr = max(C // 16, 1)
    ks = jax.random.split(key, 13)
    u = lambda k, shape, lo, hi: jax.random.uniform(k, shape, jnp.float32, lo, hi)

    # Conv weights created in PyTorch OIHW, converted to HWIO for the NHWC kernel.
    w1_oihw = jax.random.normal(ks[4], (C, C, 3, 3), jnp.float32) / (3.0 * math.sqrt(C))
    w2_oihw = jax.random.normal(ks[6], (C, C, 3, 3), jnp.float32) / (3.0 * math.sqrt(C))
    # SE 1x1 convs: fc1 (Cr, C, 1, 1), fc2 (C, Cr, 1, 1) in OIHW (no bias).
    fc1_oihw = jax.random.normal(ks[11], (Cr, C, 1, 1), jnp.float32) / math.sqrt(C)
    fc2_oihw = jax.random.normal(ks[12], (C, Cr, 1, 1), jnp.float32) / math.sqrt(max(Cr, 1))

    return {
        "bn1_g": u(ks[0], (1, C), 0.5, 1.5),
        "bn1_b": u(ks[1], (1, C), -0.2, 0.2),
        "bn1_m": u(ks[2], (1, C), -0.2, 0.2),
        "bn1_v": u(ks[3], (1, C), 0.5, 1.5),
        "w1": jnp.transpose(w1_oihw, (2, 3, 1, 0)),            # HWIO
        "alpha": jnp.full((1, C), 0.25, jnp.float32),          # PReLU default init
        "w2": jnp.transpose(w2_oihw, (2, 3, 1, 0)),            # HWIO
        "bn2_g": u(ks[7], (1, C), 0.5, 1.5),
        "bn2_b": u(ks[8], (1, C), -0.2, 0.2),
        "bn2_m": u(ks[9], (1, C), -0.2, 0.2),
        "bn2_v": u(ks[10], (1, C), 0.5, 1.5),
        "se_w1": jnp.transpose(fc1_oihw[:, :, 0, 0], (1, 0)),  # (C, Cr)
        "se_w2": jnp.transpose(fc2_oihw[:, :, 0, 0], (1, 0)),  # (Cr, C)
    }


def reference(x_nhwc, p):
    """Pure-JAX reference of the same forward pass (correctness check)."""
    x = x_nhwc.astype(jnp.float32)
    bn = lambda y, g, b, m, v: (y - m) * (g * jax.lax.rsqrt(v + EPS)) + b
    conv = lambda z, w: jax.lax.conv_general_dilated(
        z, w, window_strides=(1, 1), padding=((1, 1), (1, 1)),
        dimension_numbers=("NHWC", "HWIO", "NHWC"))
    y = bn(x, p["bn1_g"], p["bn1_b"], p["bn1_m"], p["bn1_v"])
    y = conv(y, p["w1"])
    y = jnp.where(y >= 0, y, p["alpha"] * y)
    y = conv(y, p["w2"])
    y = bn(y, p["bn2_g"], p["bn2_b"], p["bn2_m"], p["bn2_v"])
    pooled = jnp.mean(y, axis=(1, 2), keepdims=True)                     # (N,1,1,C)
    s = jnp.maximum(jnp.einsum("nijc,cr->nijr", pooled, p["se_w1"]), 0.0)
    s = jax.nn.sigmoid(jnp.einsum("nijr,rc->nijc", s, p["se_w2"]))
    y = y * s
    return jax.nn.sigmoid(y + x) * x


if __name__ == "__main__":
    key = jax.random.PRNGKey(0)
    kx, kp = jax.random.split(key)

    N, C, H, W = 2, 32, 8, 8                     # channel=32 so SE reduction 16 -> 2
    x_nchw = jax.random.normal(kx, (N, C, H, W), jnp.float32)   # PyTorch NCHW input
    x_nhwc = jnp.transpose(x_nchw, (0, 2, 3, 1))                # kernel layout (NHWC)

    params = init_params(kp, C)
    ref = reference(x_nhwc, params)

    # Exact-path check (f32 MXU operands): tight tolerance vs. the f32 reference.
    out_f32 = jax.block_until_ready(
        pixel_attention_se(x_nhwc, params, mxu_dtype=jnp.float32))
    err_f32 = float(jnp.max(jnp.abs(out_f32 - ref)))
    assert jnp.allclose(out_f32, ref, atol=5e-4, rtol=5e-4), err_f32

    # Default path (bf16 MXU operands, f32 VPU math): looser tolerance for
    # bf16 rounding through the two 3x3 convs.
    out_nhwc = jax.block_until_ready(pixel_attention_se(x_nhwc, params))
    err_bf16 = float(jnp.max(jnp.abs(out_nhwc - ref)))
    assert err_bf16 < 1e-1, err_bf16

    out_nchw = jnp.transpose(out_nhwc, (0, 3, 1, 2))            # back to PyTorch NCHW
    assert out_nchw.shape == x_nchw.shape

    print("KERNEL_OK")
</pallas_src>

<mosaic_0001>
module attributes {stable_mosaic.version = 11 : i64} {
  func.func @_kernel(%arg0: i32, %arg1: memref<1x8x256xf32, #tpu.memory_space<vmem>>, %arg2: memref<1x256xf32, #tpu.memory_space<vmem>>, %arg3: memref<1x256xf32, #tpu.memory_space<vmem>>, %arg4: memref<768x256xf32, #tpu.memory_space<vmem>>, %arg5: memref<1x256xf32, #tpu.memory_space<vmem>>, %arg6: memref<768x256xf32, #tpu.memory_space<vmem>>, %arg7: memref<1x256xf32, #tpu.memory_space<vmem>>, %arg8: memref<256x128xf32, #tpu.memory_space<vmem>>, %arg9: memref<128x256xf32, #tpu.memory_space<vmem>>, %arg10: memref<1x8x256xf32, #tpu.memory_space<vmem>>, %arg11: memref<1x8x768xf32, #tpu.memory_space<vmem>>) attributes {dimension_semantics = [#tpu.dimension_semantics<parallel>], iteration_bounds = array<i64: 2>, scalar_prefetch = 0 : i64, scratch_operands = 1 : i64, tpu.core_type = #tpu.core_type<tc>, window_params = [{transform_indices = @transform_0, window_bounds = array<i64: 1, 8, 256>}, {pipeline_mode = #tpu.pipeline_mode<synchronous>, transform_indices = @transform_1, window_bounds = array<i64: 1, 256>}, {pipeline_mode = #tpu.pipeline_mode<synchronous>, transform_indices = @transform_2, window_bounds = array<i64: 1, 256>}, {pipeline_mode = #tpu.pipeline_mode<synchronous>, transform_indices = @transform_3, window_bounds = array<i64: 768, 256>}, {pipeline_mode = #tpu.pipeline_mode<synchronous>, transform_indices = @transform_4, window_bounds = array<i64: 1, 256>}, {pipeline_mode = #tpu.pipeline_mode<synchronous>, transform_indices = @transform_5, window_bounds = array<i64: 768, 256>}, {pipeline_mode = #tpu.pipeline_mode<synchronous>, transform_indices = @transform_6, window_bounds = array<i64: 1, 256>}, {pipeline_mode = #tpu.pipeline_mode<synchronous>, transform_indices = @transform_7, window_bounds = array<i64: 256, 128>}, {pipeline_mode = #tpu.pipeline_mode<synchronous>, transform_indices = @transform_8, window_bounds = array<i64: 128, 256>}, {transform_indices = @transform_9, window_bounds = array<i64: 1, 8, 256>}]} {
    %c0 = arith.constant 0 : index
    %c0_0 = arith.constant 0 : index
    %c0_1 = arith.constant 0 : index
    %0 = vector.load %arg1[%c0, %c0_0, %c0_1] : memref<1x8x256xf32, #tpu.memory_space<vmem>>, vector<1x8x256xf32>
    %c0_2 = arith.constant 0 : index
    %c0_3 = arith.constant 0 : index
    %1 = vector.load %arg2[%c0_2, %c0_3] : memref<1x256xf32, #tpu.memory_space<vmem>>, vector<1x256xf32>
    %2 = vector.shape_cast %1 : vector<1x256xf32> to vector<1x1x256xf32>
    %3 = vector.broadcast %2 : vector<1x1x256xf32> to vector<1x8x256xf32>
    %4 = arith.mulf %0, %3 : vector<1x8x256xf32>
    %c0_4 = arith.constant 0 : index
    %c0_5 = arith.constant 0 : index
    %5 = vector.load %arg3[%c0_4, %c0_5] : memref<1x256xf32, #tpu.memory_space<vmem>>, vector<1x256xf32>
    %6 = vector.shape_cast %5 : vector<1x256xf32> to vector<1x1x256xf32>
    %7 = vector.broadcast %6 : vector<1x1x256xf32> to vector<1x8x256xf32>
    %8 = arith.addf %4, %7 : vector<1x8x256xf32>
    %cst = arith.constant 0.000000e+00 : f32
    %9 = vector.broadcast %cst : f32 to vector<1x1x256xf32>
    %c0_6 = arith.constant 0 : index
    %c0_7 = arith.constant 0 : index
    %c0_8 = arith.constant 0 : index
    %10 = vector.load %arg11[%c0_6, %c0_7, %c0_8] : memref<1x8x768xf32, #tpu.memory_space<vmem>>, vector<1x1x256xf32>
    tpu.vector_store %arg11[%c0_6, %c0_7, %c0_8], %9 {strides = array<i32>} : memref<1x8x768xf32, #tpu.memory_space<vmem>>, vector<1x1x256xf32>,
    %c0_9 = arith.constant 0 : index
    %c0_10 = arith.constant 0 : index
    %c256 = arith.constant 256 : index
    %11 = vector.load %arg11[%c0_9, %c0_10, %c256] : memref<1x8x768xf32, #tpu.memory_space<vmem>>, vector<1x8x256xf32>
    tpu.vector_store %arg11[%c0_9, %c0_10, %c256], %8 {strides = array<i32>} : memref<1x8x768xf32, #tpu.memory_space<vmem>>, vector<1x8x256xf32>,
    %c0_11 = arith.constant 0 : index
    %c7 = arith.constant 7 : index
    %c512 = arith.constant 512 : index
    %12 = vector.load %arg11[%c0_11, %c7, %c512] : memref<1x8x768xf32, #tpu.memory_space<vmem>>, vector<1x1x256xf32>
    tpu.vector_store %arg11[%c0_11, %c7, %c512], %9 {strides = array<i32>} : memref<1x8x768xf32, #tpu.memory_space<vmem>>, vector<1x1x256xf32>,
    %13 = vector.extract_strided_slice %8 {offsets = [0, 0, 0], sizes = [1, 7, 256], strides = [1, 1, 1]} : vector<1x8x256xf32> to vector<1x7x256xf32>
    %c0_12 = arith.constant 0 : index
    %c1 = arith.constant 1 : index
    %c0_13 = arith.constant 0 : index
    %14 = vector.load %arg11[%c0_12, %c1, %c0_13] : memref<1x8x768xf32, #tpu.memory_space<vmem>>, vector<1x7x256xf32>
    tpu.vector_store %arg11[%c0_12, %c1, %c0_13], %13 {strides = array<i32>} : memref<1x8x768xf32, #tpu.memory_space<vmem>>, vector<1x7x256xf32>,
    %15 = vector.extract_strided_slice %8 {offsets = [0, 1, 0], sizes = [1, 7, 256], strides = [1, 1, 1]} : vector<1x8x256xf32> to vector<1x7x256xf32>
    %c0_14 = arith.constant 0 : index
    %c0_15 = arith.constant 0 : index
    %c512_16 = arith.constant 512 : index
    %16 = vector.load %arg11[%c0_14, %c0_15, %c512_16] : memref<1x8x768xf32, #tpu.memory_space<vmem>>, vector<1x7x256xf32>
    tpu.vector_store %arg11[%c0_14, %c0_15, %c512_16], %15 {strides = array<i32>} : memref<1x8x768xf32, #tpu.memory_space<vmem>>, vector<1x7x256xf32>,
    %c0_17 = arith.constant 0 : index
    %c0_18 = arith.constant 0 : index
    %c0_19 = arith.constant 0 : index
    %17 = vector.load %arg11[%c0_17, %c0_18, %c0_19] : memref<1x8x768xf32, #tpu.memory_space<vmem>>, vector<1x8x768xf32>
    %18 = vector.shape_cast %17 : vector<1x8x768xf32> to vector<8x768xf32>
    %c0_20 = arith.constant 0 : index
    %c0_21 = arith.constant 0 : index
    %19 = vector.load %arg4[%c0_20, %c0_21] : memref<768x256xf32, #tpu.memory_space<vmem>>, vector<768x256xf32>
    %cst_22 = arith.constant dense<0.000000e+00> : vector<8x256xf32>
    %20 = tpu.matmul %18, %19, %cst_22 {dimension_numbers = #tpu.dot_dimension_numbers<[1], [0], [0], [1], [0, 0, 1, 1], [], []>} : vector<8x768xf32>, vector<768x256xf32>, vector<8x256xf32> -> vector<8x256xf32>
    %cst_23 = arith.constant 0.000000e+00 : f32
    %21 = vector.broadcast %cst_23 : f32 to vector<8x256xf32>
    %22 = arith.cmpf oge, %20, %21 : vector<8x256xf32>
    %c0_24 = arith.constant 0 : index
    %c0_25 = arith.constant 0 : index
    %23 = vector.load %arg5[%c0_24, %c0_25] : memref<1x256xf32, #tpu.memory_space<vmem>>, vector<1x256xf32>
    %24 = vector.broadcast %23 : vector<1x256xf32> to vector<8x256xf32>
    %25 = arith.mulf %24, %20 : vector<8x256xf32>
    %26 = arith.select %22, %20, %25 : vector<8x256xi1>, vector<8x256xf32>
    %27 = vector.shape_cast %26 : vector<8x256xf32> to vector<1x8x256xf32>
    %cst_26 = arith.constant 0.000000e+00 : f32
    %28 = vector.broadcast %cst_26 : f32 to vector<1x1x256xf32>
    %c0_27 = arith.constant 0 : index
    %c0_28 = arith.constant 0 : index
    %c0_29 = arith.constant 0 : index
    %29 = vector.load %arg11[%c0_27, %c0_28, %c0_29] : memref<1x8x768xf32, #tpu.memory_space<vmem>>, vector<1x1x256xf32>
    tpu.vector_store %arg11[%c0_27, %c0_28, %c0_29], %28 {strides = array<i32>} : memref<1x8x768xf32, #tpu.memory_space<vmem>>, vector<1x1x256xf32>,
    %c0_30 = arith.constant 0 : index
    %c0_31 = arith.constant 0 : index
    %c256_32 = arith.constant 256 : index
    %30 = vector.load %arg11[%c0_30, %c0_31, %c256_32] : memref<1x8x768xf32, #tpu.memory_space<vmem>>, vector<1x8x256xf32>
    tpu.vector_store %arg11[%c0_30, %c0_31, %c256_32], %27 {strides = array<i32>} : memref<1x8x768xf32, #tpu.memory_space<vmem>>, vector<1x8x256xf32>,
    %c0_33 = arith.constant 0 : index
    %c7_34 = arith.constant 7 : index
    %c512_35 = arith.constant 512 : index
    %31 = vector.load %arg11[%c0_33, %c7_34, %c512_35] : memref<1x8x768xf32, #tpu.memory_space<vmem>>, vector<1x1x256xf32>
    tpu.vector_store %arg11[%c0_33, %c7_34, %c512_35], %28 {strides = array<i32>} : memref<1x8x768xf32, #tpu.memory_space<vmem>>, vector<1x1x256xf32>,
    %32 = vector.extract_strided_slice %27 {offsets = [0, 0, 0], sizes = [1, 7, 256], strides = [1, 1, 1]} : vector<1x8x256xf32> to vector<1x7x256xf32>
    %c0_36 = arith.constant 0 : index
    %c1_37 = arith.constant 1 : index
    %c0_38 = arith.constant 0 : index
    %33 = vector.load %arg11[%c0_36, %c1_37, %c0_38] : memref<1x8x768xf32, #tpu.memory_space<vmem>>, vector<1x7x256xf32>
    tpu.vector_store %arg11[%c0_36, %c1_37, %c0_38], %32 {strides = array<i32>} : memref<1x8x768xf32, #tpu.memory_space<vmem>>, vector<1x7x256xf32>,
    %34 = vector.extract_strided_slice %27 {offsets = [0, 1, 0], sizes = [1, 7, 256], strides = [1, 1, 1]} : vector<1x8x256xf32> to vector<1x7x256xf32>
    %c0_39 = arith.constant 0 : index
    %c0_40 = arith.constant 0 : index
    %c512_41 = arith.constant 512 : index
    %35 = vector.load %arg11[%c0_39, %c0_40, %c512_41] : memref<1x8x768xf32, #tpu.memory_space<vmem>>, vector<1x7x256xf32>
    tpu.vector_store %arg11[%c0_39, %c0_40, %c512_41], %34 {strides = array<i32>} : memref<1x8x768xf32, #tpu.memory_space<vmem>>, vector<1x7x256xf32>,
    %c0_42 = arith.constant 0 : index
    %c0_43 = arith.constant 0 : index
    %c0_44 = arith.constant 0 : index
    %36 = vector.load %arg11[%c0_42, %c0_43, %c0_44] : memref<1x8x768xf32, #tpu.memory_space<vmem>>, vector<1x8x768xf32>
    %37 = vector.shape_cast %36 : vector<1x8x768xf32> to vector<8x768xf32>
    %c0_45 = arith.constant 0 : index
    %c0_46 = arith.constant 0 : index
    %38 = vector.load %arg6[%c0_45, %c0_46] : memref<768x256xf32, #tpu.memory_space<vmem>>, vector<768x256xf32>
    %cst_47 = arith.constant dense<0.000000e+00> : vector<8x256xf32>
    %39 = tpu.matmul %37, %38, %cst_47 {dimension_numbers = #tpu.dot_dimension_numbers<[1], [0], [0], [1], [0, 0, 1, 1], [], []>} : vector<8x768xf32>, vector<768x256xf32>, vector<8x256xf32> -> vector<8x256xf32>
    %c0_48 = arith.constant 0 : index
    %c0_49 = arith.constant 0 : index
    %40 = vector.load %arg7[%c0_48, %c0_49] : memref<1x256xf32, #tpu.memory_space<vmem>>, vector<1x256xf32>
    %41 = vector.broadcast %40 : vector<1x256xf32> to vector<8x256xf32>
    %42 = arith.addf %39, %41 : vector<8x256xf32>
    %43 = vector.shape_cast %42 : vector<8x256xf32> to vector<1x8x256xf32>
    %cst_50 = arith.constant dense<0.000000e+00> : vector<1x256xf32>
    %44 = vector.multi_reduction <add>, %43, %cst_50 [1] : vector<1x8x256xf32> to vector<1x256xf32>
    %c0_51 = arith.constant 0 : index
    %c0_52 = arith.constant 0 : index
    %45 = vector.load %arg8[%c0_51, %c0_52] : memref<256x128xf32, #tpu.memory_space<vmem>>, vector<256x128xf32>
    %cst_53 = arith.constant dense<0.000000e+00> : vector<1x128xf32>
    %46 = tpu.matmul %44, %45, %cst_53 {dimension_numbers = #tpu.dot_dimension_numbers<[1], [0], [0], [1], [0, 0, 1, 1], [], []>} : vector<1x256xf32>, vector<256x128xf32>, vector<1x128xf32> -> vector<1x128xf32>
    %cst_54 = arith.constant 0.000000e+00 : f32
    %47 = vector.broadcast %cst_54 : f32 to vector<1x128xf32>
    %48 = arith.maximumf %46, %47 : vector<1x128xf32>
    %c0_55 = arith.constant 0 : index
    %c0_56 = arith.constant 0 : index
    %49 = vector.load %arg9[%c0_55, %c0_56] : memref<128x256xf32, #tpu.memory_space<vmem>>, vector<128x256xf32>
    %cst_57 = arith.constant dense<0.000000e+00> : vector<1x256xf32>
    %50 = tpu.matmul %48, %49, %cst_57 {dimension_numbers = #tpu.dot_dimension_numbers<[1], [0], [0], [1], [0, 0, 1, 1], [], []>} : vector<1x128xf32>, vector<128x256xf32>, vector<1x256xf32> -> vector<1x256xf32>
    %51 = arith.negf %50 : vector<1x256xf32>
    %52 = math.exp %51 : vector<1x256xf32>
    %cst_58 = arith.constant 1.000000e+00 : f32
    %53 = vector.broadcast %cst_58 : f32 to vector<1x256xf32>
    %54 = arith.addf %53, %52 : vector<1x256xf32>
    %55 = arith.divf %53, %54 : vector<1x256xf32>
    %56 = vector.shape_cast %55 : vector<1x256xf32> to vector<1x1x256xf32>
    %57 = vector.broadcast %56 : vector<1x1x256xf32> to vector<1x8x256xf32>
    %58 = arith.mulf %43, %57 : vector<1x8x256xf32>
    %c0_59 = arith.constant 0 : index
    %c0_60 = arith.constant 0 : index
    %c0_61 = arith.constant 0 : index
    %59 = vector.load %arg1[%c0_59, %c0_60, %c0_61] : memref<1x8x256xf32, #tpu.memory_space<vmem>>, vector<1x8x256xf32>
    %60 = arith.addf %58, %59 : vector<1x8x256xf32>
    %61 = arith.negf %60 : vector<1x8x256xf32>
    %62 = math.exp %61 : vector<1x8x256xf32>
    %cst_62 = arith.constant 1.000000e+00 : f32
    %63 = vector.broadcast %cst_62 : f32 to vector<1x8x256xf32>
    %64 = arith.addf %63, %62 : vector<1x8x256xf32>
    %65 = arith.divf %63, %64 : vector<1x8x256xf32>
    %66 = arith.mulf %65, %59 : vector<1x8x256xf32>
    %c0_63 = arith.constant 0 : index
    %c0_64 = arith.constant 0 : index
    %c0_65 = arith.constant 0 : index
    %67 = vector.load %arg10[%c0_63, %c0_64, %c0_65] : memref<1x8x256xf32, #tpu.memory_space<vmem>>, vector<1x8x256xf32>
    tpu.vector_store %arg10[%c0_63, %c0_64, %c0_65], %66 {strides = array<i32>} : memref<1x8x256xf32, #tpu.memory_space<vmem>>, vector<1x8x256xf32>,
    return
  }
  func.func @transform_0(%arg0: i32) -> (i32, i32, i32) {
    %c0_i32 = arith.constant 0 : i32
    %c0_i32_0 = arith.constant 0 : i32
    %c0_i32_1 = arith.constant 0 : i32
    return %arg0, %c0_i32, %c0_i32_0 : i32, i32, i32
  }
  func.func @transform_1(%arg0: i32) -> (i32, i32) {
    %c0_i32 = arith.constant 0 : i32
    %c0_i32_0 = arith.constant 0 : i32
    %c0_i32_1 = arith.constant 0 : i32
    return %c0_i32, %c0_i32_0 : i32, i32
  }
  func.func @transform_2(%arg0: i32) -> (i32, i32) {
    %c0_i32 = arith.constant 0 : i32
    %c0_i32_0 = arith.constant 0 : i32
    %c0_i32_1 = arith.constant 0 : i32
    return %c0_i32, %c0_i32_0 : i32, i32
  }
  func.func @transform_3(%arg0: i32) -> (i32, i32) {
    %c0_i32 = arith.constant 0 : i32
    %c0_i32_0 = arith.constant 0 : i32
    %c0_i32_1 = arith.constant 0 : i32
    return %c0_i32, %c0_i32_0 : i32, i32
  }
  func.func @transform_4(%arg0: i32) -> (i32, i32) {
    %c0_i32 = arith.constant 0 : i32
    %c0_i32_0 = arith.constant 0 : i32
    %c0_i32_1 = arith.constant 0 : i32
    return %c0_i32, %c0_i32_0 : i32, i32
  }
  func.func @transform_5(%arg0: i32) -> (i32, i32) {
    %c0_i32 = arith.constant 0 : i32
    %c0_i32_0 = arith.constant 0 : i32
    %c0_i32_1 = arith.constant 0 : i32
    return %c0_i32, %c0_i32_0 : i32, i32
  }
  func.func @transform_6(%arg0: i32) -> (i32, i32) {
    %c0_i32 = arith.constant 0 : i32
    %c0_i32_0 = arith.constant 0 : i32
    %c0_i32_1 = arith.constant 0 : i32
    return %c0_i32, %c0_i32_0 : i32, i32
  }
  func.func @transform_7(%arg0: i32) -> (i32, i32) {
    %c0_i32 = arith.constant 0 : i32
    %c0_i32_0 = arith.constant 0 : i32
    %c0_i32_1 = arith.constant 0 : i32
    return %c0_i32, %c0_i32_0 : i32, i32
  }
  func.func @transform_8(%arg0: i32) -> (i32, i32) {
    %c0_i32 = arith.constant 0 : i32
    %c0_i32_0 = arith.constant 0 : i32
    %c0_i32_1 = arith.constant 0 : i32
    return %c0_i32, %c0_i32_0 : i32, i32
  }
  func.func @transform_9(%arg0: i32) -> (i32, i32, i32) {
    %c0_i32 = arith.constant 0 : i32
    %c0_i32_0 = arith.constant 0 : i32
    %c0_i32_1 = arith.constant 0 : i32
    return %arg0, %c0_i32, %c0_i32_0 : i32, i32, i32
  }
}

</mosaic_0001>

<bundles_post_ra>
// kernel: tpu_custom_call.1
= control target key start
LH: loop header
LB: loop body
LE: loop exit
PB: predicated region body
PF: predicated region fallthrough
CT: control target
= control target key end

     0   :  { %s2503_s0 = inlined_call_operand.hbm [shape: f32[2,8,256], index: 0, kind: input, shape index: {}]   ;;  %s2504_s1 = inlined_call_operand.hbm [shape: f32[1,256], index: 1, kind: input, shape index: {}]   ;;  %s2505_s2 = inlined_call_operand.vmem [shape: f32[1,256], index: 2, kind: input, shape index: {}]   ;;  %s2506_s3 = inlined_call_operand.hbm [shape: f32[768,256], index: 3, kind: input, shape index: {}]   ;;  %s2507_s4 = inlined_call_operand.vmem [shape: f32[1,256], index: 4, kind: input, shape index: {}]   ;;  %s2508_s5 = inlined_call_operand.hbm [shape: f32[768,256], index: 5, kind: input, shape index: {}]   ;;  %s2509_s6 = inlined_call_operand.vmem [shape: f32[1,256], index: 6, kind: input, shape index: {}]   ;;  %s2510_s7 = inlined_call_operand.hbm [shape: f32[256,128], index: 7, kind: input, shape index: {}]   ;;  %s2511_s8 = inlined_call_operand.hbm [shape: f32[128,256], index: 8, kind: input, shape index: {}]   ;;  %s2512_s9 = inlined_call_operand.hbm [shape: f32[2,8,256], index: 9, kind: output, shape index: {}]  }
   0x1   :  { %2517 = sst [smem:[#allocation20_spill]] %s2504_s1 }
   0x2   :  { %2518 = sst [smem:[#allocation21_spill]] %s2506_s3 }
   0x3   :  { %2519 = sst [smem:[#allocation22_spill]] %s2508_s5 }
   0x4   :  { %2520 = sst [smem:[#allocation23_spill]] %s2510_s7 }
   0x5   :  { %14 = vsyncpa [#allocation4], 0 }
   0x6   :  { %16 = vsyncpa [#allocation4 + $0x1], 0 }
   0x7   :  { %17 = vsyncpa [#allocation7], 0 }
   0x8   :  { %18 = vsyncpa [#allocation10], 0 }
   0x9   :  { %19 = vsyncpa [#allocation13], 0 }
   0xa   :  { %20 = vsyncpa [#allocation5], 0 }
   0xb   :  { %22 = vsyncpa [#allocation5 + $0x1], 0  ;;  %s2221_s30 = smov 0   ;;  %s2223_s10 = smov 0  }
   0xc   :  { %s2225_s11 = smov 0   ;;  %s2227_s12 = smov 0  }
   0xd LB: > { %s2159_s13 = smov [#allocation6]   ;;  %s2242_s15 = sadd.s32 4294967295, %s2157_s12   ;;  %s2157_s12 = sphi %s2227_s12, %s2548_s12   ;;  %s2153_s11 = sphi %s2225_s11, %s2547_s11   ;;  %s2149_s10 = sphi %s2223_s10, %s2546_s10   ;;  %s2145_s30 = sphi %s2221_s30, %s2545_s30  }
   0xe   : > { %s266_s14 = sshll.u32 %s2159_s13, 4  ;;  %p1741_p0 = scmp.ge.s32.totalorder %s2157_s12, 1  ;;  %s267_s14 = int_to_ptr.vmem [resolvable:$true] %s266_s14 }
   0xf   : > { %p2513_p1 = scmp.eq.s32.totalorder %s2242_s15, 0  ;;  %p253_p2 = scmp.lt.s32.totalorder %s2157_s12, 3 }
  0x10   : > { %s2160_s17 = smov [#allocation9]   ;;  %s2161_s20 = smov [#allocation8]  }
  0x11   : > { %p2247_p3 = pnand %p1741_p0, %p253_p2  ;;  %s295_s18 = sshll.u32 %s2160_s17, 4  ;;  %s2260_s18 = int_to_ptr.vmem [resolvable:$true] %s295_s18 }
  0x12   : > { %s279_s21 = sshll.u32 %s2161_s20, 4  ;;  %s1934_s23 = scalar_lea.vmem %s267_s14, 32  ;;  %s2262_s21 = int_to_ptr.vmem [resolvable:$true] %s279_s21 }
  0x13   : > { %s2521_s16 = scalar_select %p2247_p3, 1, 0 }
  0x14   : > { %p1829_p5 = pneg %p2247_p3  ;;  %p1935_p8 = scmp.ne.s32.totalorder %s267_s14, %s1934_s23 }
  0x15   : > { %p1942_p11 = scmp.lt.s32.totalorder %s267_s14, %s267_s14  ;;  %p1943_p12 = scmp.lt.s32.totalorder %s1934_s23, %s1934_s23 }
  0x16   : > { %p2256_p6 = pnand %p1829_p5, %p2513_p1 }
  0x17   : > { %p1944_p13 = por %p1943_p12, %p1942_p11 }
  0x18   : > { %p2266_p7 = pneg %p2256_p6 }
  0x1a   : > { %p1937_p9 = pnand %p1935_p8, %p2266_p7 }
  0x1c   : > { %p1938_p10 = pneg %p1937_p9 }
  0x1e   : > { %p1945_p0 = pnand %p1944_p13, %p1938_p10 }
  0x20   : > { %1948 = shalt.err (!%p1945_p0)
}
  0x21   : > { %s2524_s1 = sld [smem:[#allocation20_spill]]  ;;  %s1960_s26 = scalar_lea.vmem %s2260_s18, 24576 }
  0x22   : > { %p1961_p2 = scmp.ne.s32.totalorder %s2260_s18, %s1960_s26  ;;  %p1968_p9 = scmp.lt.s32.totalorder %s2260_s18, %s2260_s18 }
  0x23   : > { %p1969_p11 = scmp.lt.s32.totalorder %s1960_s26, %s1960_s26 }
  0x24   : > { %p1963_p5 = pnand %p1961_p2, %p2266_p7 }
  0x25   : > { %p1970_p10 = por %p1969_p11, %p1968_p9 }
  0x26   : > { %p1964_p8 = pneg %p1963_p5 }
  0x27   : > { %1832 = dma.hbm_to_vmem [thread:$0]  (!%p2256_p6), %s2524_s1, 32, %s267_s14, [#allocation7]  }
  0x28   : > { %p1971_p12 = pnand %p1970_p10, %p1964_p8 }
  0x2a   : > { %1974 = shalt.err (!%p1971_p12)
}
  0x2b   : > { %s2162_s27 = smov 256   ;;  %s2163_s28 = smov 16  }
  0x2c   : > { %s2525_s5 = sld [smem:[#allocation22_spill]]  ;;  %s1986_s14 = scalar_lea.vmem %s2262_s21, 24576 }
  0x2d   : > { %p1987_p13 = scmp.ne.s32.totalorder %s2262_s21, %s1986_s14  ;;  %p1994_p5 = scmp.lt.s32.totalorder %s2262_s21, %s2262_s21 }
  0x2e   : > { %p1995_p8 = scmp.lt.s32.totalorder %s1986_s14, %s1986_s14 }
  0x2f   : > { %p1989_p0 = pnand %p1987_p13, %p2266_p7 }
  0x30   : > { %p1996_p9 = por %p1995_p8, %p1994_p5 }
  0x31   : > { %p1990_p2 = pneg %p1989_p0 }
  0x32   : > { %1838 = dma.hbm_to_vmem [thread:$0]  (!%p2256_p6), %s2525_s5, 24576, %s2260_s18, [#allocation10], %s2162_s27, %s2162_s27, %s2163_s28  }
  0x33   : > { %p1997_p11 = pnand %p1996_p9, %p1990_p2 }
  0x35   : > { %2000 = shalt.err (!%p1997_p11)
}
  0x36   : > { %s2526_s3 = sld [smem:[#allocation21_spill]]  ;;  %s2164_s18 = smov [#allocation11]  }
  0x37   : > { %s311_s23 = sshll.u32 %s2164_s18, 4  ;;  %s312_s23 = int_to_ptr.vmem [resolvable:$true] %s311_s23 }
  0x38   : > { %s2012_s24 = scalar_lea.vmem %s312_s23, 4096  ;;  %p2020_p0 = scmp.lt.s32.totalorder %s312_s23, %s312_s23 }
  0x39   : > { %p2013_p10 = scmp.ne.s32.totalorder %s312_s23, %s2012_s24  ;;  %p2021_p2 = scmp.lt.s32.totalorder %s2012_s24, %s2012_s24 }
  0x3b   : > { %p2015_p12 = pnand %p2013_p10, %p2266_p7  ;;  %p2022_p5 = por %p2021_p2, %p2020_p0 }
  0x3c   : > { %1835 = dma.hbm_to_vmem [thread:$0]  (!%p2256_p6), %s2526_s3, 24576, %s2262_s21, [#allocation7], %s2162_s27, %s2162_s27, %s2163_s28  }
  0x3d   : > { %p2016_p13 = pneg %p2015_p12 }
  0x3f   : > { %p2023_p8 = pnand %p2022_p5, %p2016_p13 }
  0x41   : > { %2026 = shalt.err (!%p2023_p8)
}
  0x42   : > { %s2165_s25 = smov 128   ;;  %s2166_s26 = smov 8  }
  0x43   : > { %s2527_s7 = sld [smem:[#allocation23_spill]]  ;;  %s2167_s13 = smov [#allocation12]  }
  0x44   : > { %s324_s14 = sshll.u32 %s2167_s13, 4  ;;  %s325_s14 = int_to_ptr.vmem [resolvable:$true] %s324_s14 }
  0x45   : > { %s2038_s17 = scalar_lea.vmem %s325_s14, 4096  ;;  %p2046_p12 = scmp.lt.s32.totalorder %s325_s14, %s325_s14 }
  0x46   : > { %p2039_p9 = scmp.ne.s32.totalorder %s325_s14, %s2038_s17  ;;  %p2047_p13 = scmp.lt.s32.totalorder %s2038_s17, %s2038_s17 }
  0x48   : > { %p2041_p11 = pnand %p2039_p9, %p2266_p7  ;;  %p2048_p0 = por %p2047_p13, %p2046_p12 }
  0x49   : > { %1841 = dma.hbm_to_vmem [thread:$0]  (!%p2256_p6), %s2527_s7, 4096, %s312_s23, [#allocation10], %s2165_s25, %s2165_s25, %s2166_s26  }
  0x4a   : > { %p2042_p10 = pneg %p2041_p11 }
  0x4c   : > { %p2049_p2 = pnand %p2048_p0, %p2042_p10 }
  0x4e   : > { %2052 = shalt.err (!%p2049_p2)
}
  0x4f   : > { %1844 = dma.hbm_to_vmem [thread:$0]  (!%p2256_p6), %s2511_s8, 4096, %s325_s14, [#allocation13], %s2162_s27, %s2162_s27, %s2163_s28  }
  0x50   : > { %s1740_s19 = sadd.s32 4294967294, %s2157_s12   ;;  %s2326_s22 = sadd.s32 1, %s2157_s12  }
  0x51   : > { %s35_s23 = sadd.s32 1, %s2153_s11  ;;  %s32_s24 = ssub.s32 %s2157_s12, %s2326_s22 }
  0x52   : > { %p42_p7 = scmp.ne.s32.totalorder %s2153_s11, %s2149_s10  ;;  %p33_p5 = scmp.eq.s32.totalorder %s32_s24, 0 }
  0x53   : > { %p43_p8 = scmp.eq.s32.totalorder %s2157_s12, 0  ;;  %p48_p9 = scmp.ne.s32.totalorder %s2149_s10, %s2145_s30 }
  0x54   : > { %p240_p11 = scmp.eq.s32.totalorder %s2242_s15, 1  ;;  %p246_p13 = scmp.eq.s32.totalorder %s1740_s19, 1 }
  0x55   : > { %s2338_s25 = scalar_select %p33_p5, %s2153_s11, %s35_s23  }
  0x56   : > { %p44_p10 = por %p43_p8, %p42_p7  ;;  %p2342_p12 = por %p2513_p1, %p48_p9 }
  0x57   : > { %p2346_p6 = por %p240_p11, %p42_p7  ;;  %p1858_p0 = scmp.lt.s32.totalorder %s2157_s12, 2 }
  0x58   : > { %s2528_s26 = scalar_select %p2342_p12, 1, 0 }
  0x59   : > { %s2529_s27 = scalar_select %p2346_p6, 1, 0 }
  0x5a   : > { %s338_s28 = sand.u32 1, %s2153_s11   ;;  %p2352_p2 = por %p246_p13, %p48_p9 }
  0x5b   : > { %s1748_s21 = sshll.u32 %s338_s28, 4  ;;  %s1768_s13 = sshll.u32 %s2157_s12, 8 }
  0x5c   : > { %s2530_s29 = scalar_select %p2352_p2, 1, 0 }
  0x5d   : > { %s2360_s20 = scalar_lea.hbm %s2503_s0, %s1768_s13  ;;  %s342_s18 = scalar_lea.vmem [#allocation3], %s1748_s21 }
  0x5e   : > { %s350_s23 = sshll.u32 %s342_s18, 4  ;;  %p2362_p7 = pnand %p1858_p0, %p44_p10  ;;  %s351_s23 = int_to_ptr.vmem [resolvable:$true] %s350_s23 }
  0x5f   : > { %s339_s24 = scalar_lea.sflag [#allocation4], %s338_s28  ;;  %s2053_s1 = scalar_lea.hbm %s2360_s20, 256 }
  0x60   : > { %p2054_p5 = scmp.ne.s32.totalorder %s2360_s20, %s2053_s1  ;;  %p2055_p8 = pneg %p2362_p7 }
  0x61   : > { %s2058_s17 = scalar_lea.hbm %s2503_s0, 512  ;;  %p2059_p10 = scmp.lt.s32.totalorder %s2360_s20, %s2503_s0 }
  0x62   : > { %p2056_p9 = pnand %p2055_p8, %p2054_p5  ;;  %p2060_p13 = scmp.lt.s32.totalorder %s2058_s17, %s2053_s1 }
  0x64   : > { %p2057_p11 = pneg %p2056_p9  ;;  %p2061_p0 = por %p2060_p13, %p2059_p10 }
  0x66   : > { %p2062_p4 = pnand %p2061_p0, %p2057_p11 }
  0x68   : > { %2065 = shalt.err (!%p2062_p4)
}
  0x69   : > { %s2066_s18 = scalar_lea.vmem %s351_s23, 256  ;;  %s2168_s28 = smov [#allocation3]  }
  0x6a   : > { %p2067_p1 = scmp.ne.s32.totalorder %s351_s23, %s2066_s18  ;;  %s2071_s5 = sshll.u32 %s2168_s28, 4  ;;  %s2072_s5 = int_to_ptr.vmem [resolvable:$false] %s2071_s5 }
  0x6b   : > { %s2073_s7 = scalar_lea.vmem %s2072_s5, 512  ;;  %p2074_p5 = scmp.lt.s32.totalorder %s351_s23, %s2072_s5 }
  0x6c   : > { %p2069_p2 = pnand %p2067_p1, %p2055_p8  ;;  %p2075_p9 = scmp.lt.s32.totalorder %s2073_s7, %s2066_s18 }
  0x6e   : > { %p2070_p6 = pneg %p2069_p2  ;;  %p2076_p12 = por %p2075_p9, %p2074_p5 }
  0x70   : > { %p2077_p3 = pnand %p2076_p12, %p2070_p6 }
  0x72   : > { %2080 = shalt.err (!%p2077_p3)
}
  0x73   : > { %1848 = dma.hbm_to_vmem [thread:$0]  (!%p2362_p7), %s2360_s20, 256, %s351_s23, %s339_s24  }
  0x74   : > { %p2532_p11 = scmp.ne.s32.totalorder %s2521_s16, 0 }
  0x75   : > { %s2383_s1 = sand.u32 (!%p2532_p11), 1, %s2149_s10   ;;  %p2533_p1 = scmp.ne.s32.totalorder (!%p2532_p11), %s2528_s26, 0 }
  0x76   : > { %359 = sbr.rel (%p2532_p11) target bundleno = 1228 (0x4cc), region = 56  ;;  %s1752_s3 = sshll.u32 (!%p2532_p11), %s2383_s1, 4 }
  0x77   : > { %s362_s5 = scalar_lea.sflag (!%p2532_p11), [#allocation4], %s2383_s1  ;;  %s2389_s7 = scalar_lea.vmem (!%p2532_p11), [#allocation3], %s1752_s3 }
  0x7b   : > { %2124 = dma.done.wait (%p2533_p1), %s362_s5, 256  }
  0x7c   : > { %2126 = vsyncadd (%p2533_p1), %s362_s5, 4294967040  ;;  %p2534_p3 = scmp.eq.s32.totalorder %s2242_s15, 0 }
  0x7e   : > { %2128 = dma.done.wait (%p2534_p3), [#allocation7], 24608   ;;  %p2535_p4 = pmov %p2534_p3 }
  0x7f   : > { %p2536_p12 = pmov %p2534_p3 }
  0x80   : > { %2130 = vsyncadd (%p2535_p4), [#allocation7], 4294942688 }
  0x81   : > { %2132 = dma.done.wait (%p2536_p12), [#allocation10], 28672   ;;  %p2537_p6 = pmov %p2534_p3 }
  0x82   : > { %p2538_p2 = pmov %p2534_p3 }
  0x83   : > { %2134 = vsyncadd (%p2537_p6), [#allocation10], 4294938624 }
  0x84   : > { %2136 = dma.done.wait (%p2538_p2), [#allocation13], 4096   ;;  %p2539_p7 = pmov %p2538_p2 }
  0x85   : > { %v424_v0 = vlaneseq  ;;  %v2169_v2 = vmov 0.0   ;;  %v512_v3 = vld [vmem:[#allocation8 + $0xf8] sm:$0xff]  ;;  %v511_v5 = vld [vmem:[#allocation8 + $0xf0] sm:$0xff]  ;;  %v510_v7 = vld [vmem:[#allocation8 + $0xe8] sm:$0xff]  ;;  %s1769_s13 = sshll.u32 %s2242_s15, 8  ;;  %s419_s14 = scalar_lea.vmem [#allocation14], %s1752_s3 }
  0x86   : > { %2138 = vsyncadd (%p2539_p7), [#allocation13], 4294963200  ;;  %v576_v4 = vld [vmem:[#allocation8 + $0x2f8] sm:$0xff]  ;;  %673 = vmatprep.subr.mxu0 %v512_v3  ;;  %v575_v6 = vld [vmem:[#allocation8 + $0x2f0] sm:$0xff]  ;;  %s1622_s17 = sshll.u32 %s419_s14, 4  ;;  %s1620_s28 = scalar_lea.hbm %s2512_s9, %s1769_s13  ;;  %s1623_s17 = int_to_ptr.vmem [resolvable:$true] %s1622_s17 }
  0x87   : > { %vm2408_vm0 = vcmp.lt.s32.totalorder %v424_v0, 256  ;;  %744 = vmatprep.subr.mxu1 %v576_v4  ;;  %v574_v8 = vld [vmem:[#allocation8 + $0x2e8] sm:$0xff]  ;;  %674 = vmatpush1.msra.mxu0 %v511_v5  ;;  %v509_v9 = vld [vmem:[#allocation8 + $0xe0] sm:$0xff]  ;;  %v508_v11 = vld [vmem:[#allocation8 + $0xd8] sm:$0xff]  ;;  %s1608_s5 = scalar_lea.sflag [#allocation5], %s2383_s1  ;;  %p2542_p10 = scmp.ne.s32.totalorder %s2529_s27, 0 }
  0x88   : > { %454 = vst.msk [vmem:[#allocation2] ss:$8 sm:$0x3] %vm2408_vm0, %v2169_v2  ;;  %459 = vst.msk [vmem:[#allocation2 + $0x27] ss:$8 sm:$0x3] %vm2408_vm0, %v2169_v2  ;;  %745 = vmatpush1.msra.mxu1 %v575_v6  ;;  %675 = vmatprep.subr.mxu0 %v510_v7 }
  0x89   : > { %v573_v10 = vld [vmem:[#allocation8 + $0x2e0] sm:$0xff]  ;;  %746 = vmatprep.subr.mxu1 %v574_v8  ;;  %v572_v12 = vld [vmem:[#allocation8 + $0x2d8] sm:$0xff]  ;;  %v507_v13 = vld [vmem:[#allocation8 + $0xd0] sm:$0xff]  ;;  %676 = vmatpush1.msra.mxu0 %v509_v9  ;;  %s2170_s15 = smov [#allocation14]  }
  0x8a   : > { %v571_v14 = vld [vmem:[#allocation8 + $0x2d0] sm:$0xff]  ;;  %747 = vmatpush1.msra.mxu1 %v573_v10  ;;  %v506_v15 = vld [vmem:[#allocation8 + $0xc8] sm:$0xff]  ;;  %677 = vmatprep.subr.mxu0 %v508_v11  ;;  %v505_v17 = vld [vmem:[#allocation8 + $0xc0] sm:$0xff]  ;;  %s2085_s16 = sshll.u32 %s2170_s15, 4  ;;  %s2086_s16 = int_to_ptr.vmem [resolvable:$false] %s2085_s16 }
  0x8b   : > { %v570_v16 = vld [vmem:[#allocation8 + $0x2c8] sm:$0xff]  ;;  %748 = vmatprep.subr.mxu1 %v572_v12  ;;  %v569_v18 = vld [vmem:[#allocation8 + $0x2c0] sm:$0xff]  ;;  %678 = vmatpush1.msra.mxu0 %v507_v13  ;;  %v504_v19 = vld [vmem:[#allocation8 + $0xb8] sm:$0xff]  ;;  %s2087_s3 = scalar_lea.vmem %s2086_s16, 512  ;;  %p2088_p5 = scmp.lt.s32.totalorder %s1623_s17, %s2086_s16 }
  0x8c   : > { %749 = vmatpush1.msra.mxu1 %v571_v14  ;;  %v568_v20 = vld [vmem:[#allocation8 + $0x2b8] sm:$0xff]  ;;  %679 = vmatprep.subr.mxu0 %v506_v15  ;;  %v503_v21 = vld [vmem:[#allocation8 + $0xb0] sm:$0xff]  ;;  %v502_v23 = vld [vmem:[#allocation8 + $0xa8] sm:$0xff] }
  0x8d   : > { %750 = vmatprep.subr.mxu1 %v570_v16  ;;  %v567_v22 = vld [vmem:[#allocation8 + $0x2b0] sm:$0xff]  ;;  %680 = vmatpush1.msra.mxu0 %v505_v17  ;;  %v566_v24 = vld [vmem:[#allocation8 + $0x2a8] sm:$0xff]  ;;  %v501_v25 = vld [vmem:[#allocation8 + $0xa0] sm:$0xff] }
  0x8e   : > { %751 = vmatpush1.msra.mxu1 %v569_v18  ;;  %681 = vmatprep.subr.mxu0 %v504_v19  ;;  %v565_v26 = vld [vmem:[#allocation8 + $0x2a0] sm:$0xff]  ;;  %v500_v27 = vld [vmem:[#allocation8 + $0x98] sm:$0xff]  ;;  %v499_v29 = vld [vmem:[#allocation8 + $0x90] sm:$0xff]  ;;  %v425_v18 = vshrl.u32 %v424_v0, 7 }
  0x8f   : > { %752 = vmatprep.subr.mxu1 %v568_v20  ;;  %682 = vmatpush1.msra.mxu0 %v503_v21  ;;  %v564_v28 = vld [vmem:[#allocation8 + $0x298] sm:$0xff]  ;;  %v563_v30 = vld [vmem:[#allocation8 + $0x290] sm:$0xff]  ;;  %v498_v31 = vld [vmem:[#allocation8 + $0x88] sm:$0xff] }
  0x90   : > { %753 = vmatpush1.msra.mxu1 %v567_v22  ;;  %683 = vmatprep.subr.mxu0 %v502_v23  ;;  %v562_v32 = vld [vmem:[#allocation8 + $0x288] sm:$0xff]  ;;  %v497_v33 = vld [vmem:[#allocation8 + $0x80] sm:$0xff]  ;;  %v496_v35 = vld [vmem:[#allocation8 + $0x78] sm:$0xff]  ;;  %v2421_v0 = vsub.s32 1, %v425_v18 }
  0x91   : > { %754 = vmatprep.subr.mxu1 %v566_v24  ;;  %684 = vmatpush1.msra.mxu0 %v501_v25  ;;  %v561_v34 = vld [vmem:[#allocation8 + $0x280] sm:$0xff]  ;;  %v560_v36 = vld [vmem:[#allocation8 + $0x278] sm:$0xff]  ;;  %v495_v37 = vld [vmem:[#allocation8 + $0x70] sm:$0xff] }
  0x92   : > { %755 = vmatpush1.msra.mxu1 %v565_v26  ;;  %685 = vmatprep.subr.mxu0 %v500_v27  ;;  %v559_v38 = vld [vmem:[#allocation8 + $0x270] sm:$0xff]  ;;  %v494_v39 = vld [vmem:[#allocation8 + $0x68] sm:$0xff]  ;;  %v493_v41 = vld [vmem:[#allocation8 + $0x60] sm:$0xff]  ;;  %v2419_v27 = vsub.s32 0, %v425_v18 }
  0x93   : > { %756 = vmatprep.subr.mxu1 %v564_v28  ;;  %686 = vmatpush1.msra.mxu0 %v499_v29  ;;  %v558_v40 = vld [vmem:[#allocation8 + $0x268] sm:$0xff]  ;;  %v557_v42 = vld [vmem:[#allocation8 + $0x260] sm:$0xff]  ;;  %v492_v43 = vld [vmem:[#allocation8 + $0x58] sm:$0xff] }
  0x94   : > { %757 = vmatpush1.msra.mxu1 %v563_v30  ;;  %687 = vmatprep.subr.mxu0 %v498_v31  ;;  %v556_v44 = vld [vmem:[#allocation8 + $0x258] sm:$0xff]  ;;  %v491_v45 = vld [vmem:[#allocation8 + $0x50] sm:$0xff]  ;;  %v490_v47 = vld [vmem:[#allocation8 + $0x48] sm:$0xff] }
  0x95   : > { %758 = vmatprep.subr.mxu1 %v562_v32  ;;  %688 = vmatpush1.msra.mxu0 %v497_v33  ;;  %v555_v46 = vld [vmem:[#allocation8 + $0x250] sm:$0xff]  ;;  %v554_v48 = vld [vmem:[#allocation8 + $0x248] sm:$0xff]  ;;  %v489_v49 = vld [vmem:[#allocation8 + $0x40] sm:$0xff] }
  0x96   : > { %759 = vmatpush1.msra.mxu1 %v561_v34  ;;  %689 = vmatprep.subr.mxu0 %v496_v35  ;;  %v553_v50 = vld [vmem:[#allocation8 + $0x240] sm:$0xff]  ;;  %v488_v51 = vld [vmem:[#allocation8 + $0x38] sm:$0xff]  ;;  %v487_v53 = vld [vmem:[#allocation8 + $0x30] sm:$0xff] }
  0x97   : > { %760 = vmatprep.subr.mxu1 %v560_v36  ;;  %690 = vmatpush1.msra.mxu0 %v495_v37  ;;  %v552_v52 = vld [vmem:[#allocation8 + $0x238] sm:$0xff]  ;;  %v551_v54 = vld [vmem:[#allocation8 + $0x230] sm:$0xff]  ;;  %v486_v55 = vld [vmem:[#allocation8 + $0x28] sm:$0xff] }
  0x98   : > { %761 = vmatpush1.msra.mxu1 %v559_v38  ;;  %691 = vmatprep.subr.mxu0 %v494_v39  ;;  %v550_v56 = vld [vmem:[#allocation8 + $0x228] sm:$0xff]  ;;  %v485_v57 = vld [vmem:[#allocation8 + $0x20] sm:$0xff]  ;;  %v484_v59 = vld [vmem:[#allocation8 + $0x18] sm:$0xff] }
  0x99   : > { %762 = vmatprep.subr.mxu1 %v558_v40  ;;  %692 = vmatpush1.msra.mxu0 %v493_v41  ;;  %v549_v58 = vld [vmem:[#allocation8 + $0x220] sm:$0xff]  ;;  %v548_v60 = vld [vmem:[#allocation8 + $0x218] sm:$0xff]  ;;  %v483_v61 = vld [vmem:[#allocation8 + $0x10] sm:$0xff] }
  0x9a   : > { %763 = vmatpush1.msra.mxu1 %v557_v42  ;;  %693 = vmatprep.subr.mxu0 %v492_v43  ;;  %v547_v62 = vld [vmem:[#allocation8 + $0x210] sm:$0xff]  ;;  %v482_v63 = vld [vmem:[#allocation8 + $0x8] sm:$0xff]  ;;  %v481_v4 = vld [vmem:[#allocation8] sm:$0xff] }
  0x9b   : > { %764 = vmatprep.subr.mxu1 %v556_v44  ;;  %694 = vmatpush1.msra.mxu0 %v491_v45  ;;  %v546_v3 = vld [vmem:[#allocation8 + $0x208] sm:$0xff]  ;;  %v545_v5 = vld [vmem:[#allocation8 + $0x200] sm:$0xff]  ;;  %v544_v6 = vld [vmem:[#allocation8 + $0x1f8] sm:$0xff] }
  0x9c   : > { %765 = vmatpush1.msra.mxu1 %v555_v46  ;;  %695 = vmatprep.subr.mxu0 %v490_v47  ;;  %v608_v7 = vld [vmem:[#allocation8 + $0x3f8] sm:$0xff]  ;;  %v543_v8 = vld [vmem:[#allocation8 + $0x1f0] sm:$0xff]  ;;  %v542_v10 = vld [vmem:[#allocation8 + $0x1e8] sm:$0xff] }
  0x9d   : > { %766 = vmatprep.subr.mxu1 %v554_v48  ;;  %696 = vmatpush1.msra.mxu0 %v489_v49  ;;  %v607_v9 = vld [vmem:[#allocation8 + $0x3f0] sm:$0xff]  ;;  %v606_v11 = vld [vmem:[#allocation8 + $0x3e8] sm:$0xff]  ;;  %v541_v12 = vld [vmem:[#allocation8 + $0x1e0] sm:$0xff] }
  0x9e   : > { %767 = vmatpush1.msra.mxu1 %v553_v50  ;;  %697 = vmatprep.subr.mxu0 %v488_v51  ;;  %v605_v13 = vld [vmem:[#allocation8 + $0x3e0] sm:$0xff]  ;;  %v540_v14 = vld [vmem:[#allocation8 + $0x1d8] sm:$0xff]  ;;  %v539_v16 = vld [vmem:[#allocation8 + $0x1d0] sm:$0xff] }
  0x9f   : > { %768 = vmatprep.subr.mxu1 %v552_v52  ;;  %698 = vmatpush1.msra.mxu0 %v487_v53  ;;  %v604_v15 = vld [vmem:[#allocation8 + $0x3d8] sm:$0xff]  ;;  %v603_v17 = vld [vmem:[#allocation8 + $0x3d0] sm:$0xff]  ;;  %v538_v19 = vld [vmem:[#allocation8 + $0x1c8] sm:$0xff] }
  0xa0   : > { %769 = vmatpush1.msra.mxu1 %v551_v54  ;;  %699 = vmatprep.subr.mxu0 %v486_v55  ;;  %v602_v20 = vld [vmem:[#allocation8 + $0x3c8] sm:$0xff]  ;;  %v537_v21 = vld [vmem:[#allocation8 + $0x1c0] sm:$0xff]  ;;  %v536_v23 = vld [vmem:[#allocation8 + $0x1b8] sm:$0xff] }
  0xa1   : > { %770 = vmatprep.subr.mxu1 %v550_v56  ;;  %700 = vmatpush1.msra.mxu0 %v485_v57  ;;  %v601_v22 = vld [vmem:[#allocation8 + $0x3c0] sm:$0xff]  ;;  %v600_v24 = vld [vmem:[#allocation8 + $0x3b8] sm:$0xff]  ;;  %v535_v25 = vld [vmem:[#allocation8 + $0x1b0] sm:$0xff] }
  0xa2   : > { %771 = vmatpush1.msra.mxu1 %v549_v58  ;;  %701 = vmatprep.subr.mxu0 %v484_v59  ;;  %v599_v26 = vld [vmem:[#allocation8 + $0x3b0] sm:$0xff]  ;;  %v534_v28 = vld [vmem:[#allocation8 + $0x1a8] sm:$0xff]  ;;  %v533_v30 = vld [vmem:[#allocation8 + $0x1a0] sm:$0xff] }
  0xa3   : > { %772 = vmatprep.subr.mxu1 %v548_v60  ;;  %702 = vmatpush1.msra.mxu0 %v483_v61  ;;  %v598_v29 = vld [vmem:[#allocation8 + $0x3a8] sm:$0xff]  ;;  %v597_v31 = vld [vmem:[#allocation8 + $0x3a0] sm:$0xff]  ;;  %v532_v32 = vld [vmem:[#allocation8 + $0x198] sm:$0xff] }
  0xa4   : > { %773 = vmatpush1.msra.mxu1 %v547_v62  ;;  %703 = vmatprep.subr.mxu0 %v482_v63  ;;  %v596_v33 = vld [vmem:[#allocation8 + $0x398] sm:$0xff]  ;;  %v531_v34 = vld [vmem:[#allocation8 + $0x190] sm:$0xff]  ;;  %v436_v39 = vld [vmem:[%s2505_s2] sm:$0x3] }
  0xa5   : > { %774 = vmatprep.subr.mxu1 %v546_v3  ;;  %704 = vmatpush1.msra.mxu0 %v481_v4  ;;  %v421_v35 = vld [vmem:[%s2389_s7 + $0x8] sm:$0xff]  ;;  %v422_v36 = vld [vmem:[#allocation6] sm:$0x3]  ;;  %v445_v44 = vrot.slane %v436_v39, %v2421_v0  ;;  %v441_v45 = vrot.slane %v436_v39, %v2419_v27 }
  0xa6   : > { %775 = vmatpush1.msra.mxu1 %v545_v5  ;;  %705 = vmatprep.subr.mxu0 %v544_v6  ;;  %v595_v37 = vld [vmem:[#allocation8 + $0x390] sm:$0xff]  ;;  %v431_v38 = vrot.slane %v422_v36, %v2421_v0  ;;  %v427_v41 = vrot.slane %v422_v36, %v2419_v27  ;;  %v530_v42 = vld [vmem:[#allocation8 + $0x188] sm:$0xff]  ;;  %v529_v46 = vld [vmem:[#allocation8 + $0x180] sm:$0xff] }
  0xa7   : > { %776 = vmatprep.subr.mxu1 %v608_v7  ;;  %706 = vmatpush2.msra.mxu0 %v543_v8  ;;  %v420_v40 = vld [vmem:[%s2389_s7] sm:$0xff] }
  0xa8   : > { %777 = vmatpush2.msra.mxu1 %v607_v9  ;;  %707 = vmatprep.subr.mxu0 %v542_v10  ;;  %v594_v43 = vld [vmem:[#allocation8 + $0x388] sm:$0xff]  ;;  %v593_v47 = vld [vmem:[#allocation8 + $0x380] sm:$0xff]  ;;  %v435_v48 = vmul.f32 %v431_v38, %v421_v35  ;;  %v434_v49 = vmul.f32 %v427_v41, %v420_v40  ;;  %v528_v50 = vld [vmem:[#allocation8 + $0x178] sm:$0xff] }
  0xa9   : > { %778 = vmatprep.subr.mxu1 %v606_v11  ;;  %708 = vmatpush2.msra.mxu0 %v541_v12  ;;  %v592_v51 = vld [vmem:[#allocation8 + $0x378] sm:$0xff]  ;;  %v527_v52 = vld [vmem:[#allocation8 + $0x170] sm:$0xff]  ;;  %v526_v56 = vld [vmem:[#allocation8 + $0x168] sm:$0xff] }
  0xaa   : > { %779 = vmatpush2.msra.mxu1 %v605_v13  ;;  %709 = vmatprep.subr.mxu0 %v540_v14  ;;  %v591_v53 = vld [vmem:[#allocation8 + $0x370] sm:$0xff]  ;;  %v2432_v54 = vadd.f32 %v445_v44, %v435_v48  ;;  %v2434_v55 = vadd.f32 %v441_v45, %v434_v49  ;;  %v590_v57 = vld [vmem:[#allocation8 + $0x368] sm:$0xff]  ;;  %v525_v58 = vld [vmem:[#allocation8 + $0x160] sm:$0xff] }
  0xab   : > { %780 = vmatprep.subr.mxu1 %v604_v15  ;;  %710 = vmatpush2.msra.mxu0 %v539_v16  ;;  %v589_v59 = vld [vmem:[#allocation8 + $0x360] sm:$0xff]  ;;  %v524_v63 = vld [vmem:[#allocation8 + $0x158] sm:$0xff]  ;;  %v523_v5 = vld [vmem:[#allocation8 + $0x150] sm:$0xff] }
  0xac   : > { %781 = vmatpush2.msra.mxu1 %v603_v17  ;;  %711 = vmatprep.subr.mxu0 %v538_v19  ;;  %v464_v60 = vrot.slane %v2432_v54, 7  ;;  %v463_v61 = vrot.slane %v2434_v55, 7  ;;  %v470_v62 = vrot.slane %v2432_v54, 1  ;;  %v588_v3 = vld [vmem:[#allocation8 + $0x358] sm:$0xff]  ;;  %v469_v4 = vrot.slane %v2434_v55, 1  ;;  %v587_v6 = vld [vmem:[#allocation8 + $0x350] sm:$0xff] }
  0xad   : > { %782 = vmatprep.subr.mxu1 %v602_v20  ;;  %712 = vmatpush2.msra.mxu0 %v537_v21  ;;  %v522_v7 = vld [vmem:[#allocation8 + $0x148] sm:$0xff]  ;;  %v521_v9 = vld [vmem:[#allocation8 + $0x140] sm:$0xff]  ;;  %v520_v11 = vld [vmem:[#allocation8 + $0x138] sm:$0xff] }
  0xae   : > { %783 = vmatpush2.msra.mxu1 %v601_v22  ;;  %713 = vmatprep.subr.mxu0 %v536_v23  ;;  %468 = vst [vmem:[#allocation2 + $0x8] sm:$0xfe] %v464_v60  ;;  %467 = vst [vmem:[#allocation2] sm:$0xfe] %v463_v61  ;;  %v586_v8 = vld [vmem:[#allocation8 + $0x348] sm:$0xff]  ;;  %v585_v10 = vld [vmem:[#allocation8 + $0x340] sm:$0xff] }
  0xaf   : > { %784 = vmatprep.subr.mxu1 %v600_v24  ;;  %714 = vmatpush2.msra.mxu0 %v535_v25  ;;  %474 = vst [vmem:[#allocation2 + $0x28] sm:$0x7f] %v470_v62  ;;  %473 = vst [vmem:[#allocation2 + $0x20] sm:$0x7f] %v469_v4  ;;  %v584_v12 = vld [vmem:[#allocation8 + $0x338] sm:$0xff]  ;;  %v519_v13 = vld [vmem:[#allocation8 + $0x130] sm:$0xff] }
  0xb0   : > { %785 = vmatpush2.msra.mxu1 %v599_v26  ;;  %715 = vmatprep.subr.mxu0 %v534_v28  ;;  %v583_v14 = vld [vmem:[#allocation8 + $0x330] sm:$0xff]  ;;  %v518_v15 = vld [vmem:[#allocation8 + $0x128] sm:$0xff]  ;;  %v517_v17 = vld [vmem:[#allocation8 + $0x120] sm:$0xff] }
  0xb1   : > { %786 = vmatprep.subr.mxu1 %v598_v29  ;;  %716 = vmatpush2.msra.mxu0 %v533_v30  ;;  %v582_v16 = vld [vmem:[#allocation8 + $0x328] sm:$0xff]  ;;  %v581_v18 = vld [vmem:[#allocation8 + $0x320] sm:$0xff]  ;;  %v516_v19 = vld [vmem:[#allocation8 + $0x118] sm:$0xff] }
  0xb2   : > { %787 = vmatpush2.msra.mxu1 %v597_v31  ;;  %717 = vmatprep.subr.mxu0 %v532_v32  ;;  %v580_v20 = vld [vmem:[#allocation8 + $0x318] sm:$0xff]  ;;  %v515_v23 = vld [vmem:[#allocation8 + $0x110] sm:$0xff]  ;;  %v514_v25 = vld [vmem:[#allocation8 + $0x108] sm:$0xff] }
  0xb3   : > { %788 = vmatprep.subr.mxu1 %v596_v33  ;;  %718 = vmatpush2.msra.mxu0 %v531_v34  ;;  %v579_v24 = vld [vmem:[#allocation8 + $0x310] sm:$0xff]  ;;  %v578_v26 = vld [vmem:[#allocation8 + $0x308] sm:$0xff]  ;;  %v513_v28 = vld [vmem:[#allocation8 + $0x100] sm:$0xff] }
  0xb4   : > { %789 = vmatpush2.msra.mxu1 %v595_v37  ;;  %719 = vmatprep.subr.mxu0 %v530_v42  ;;  %v577_v29 = vld [vmem:[#allocation8 + $0x300] sm:$0xff]  ;;  %v640_v30 = vld [vmem:[#allocation8 + $0x4f8] sm:$0xff]  ;;  %v639_v31 = vld [vmem:[#allocation8 + $0x4f0] sm:$0xff] }
  0xb5   : > { %790 = vmatprep.subr.mxu1 %v594_v43  ;;  %720 = vmatpush2.msra.mxu0 %v529_v46  ;;  %v476_v21 = vld [vmem:[#allocation2 + $0x8] sm:$0xff]  ;;  %v475_v22 = vld [vmem:[#allocation2] sm:$0xff]  ;;  %v637_v35 = vld [vmem:[#allocation8 + $0x4e0] sm:$0xff] }
  0xb6   : > { %791 = vmatpush2.msra.mxu1 %v593_v47  ;;  %721 = vmatprep.subr.mxu0 %v528_v50  ;;  %904 = vst.msk [vmem:[#allocation2] ss:$8 sm:$0x3] %vm2408_vm0, %v2169_v2  ;;  %v638_v32 = vld [vmem:[#allocation8 + $0x4e8] sm:$0xff]  ;;  %v480_v33 = vld [vmem:[#allocation2 + $0x28] sm:$0xff]  ;;  %v633_v39 = vld [vmem:[#allocation8 + $0x4c0] sm:$0xff] }
  0xb7   : > { %792 = vmatprep.subr.mxu1 %v592_v51  ;;  %722 = vmatpush2.msra.mxu0 %v527_v52  ;;  %v2445_v34 = vld [vmem:[#allocation2 + $0x20] sm:$0xff]  ;;  %v636_v36 = vld [vmem:[#allocation8 + $0x4d8] sm:$0xff]  ;;  %v629_v43 = vld [vmem:[#allocation8 + $0x4a0] sm:$0xff] }
  0xb8   : > { %793 = vmatpush2.msra.mxu1 %v591_v53  ;;  %723 = vmatprep.subr.mxu0 %v526_v56  ;;  %908 = vst.msk [vmem:[#allocation2 + $0x27] ss:$8 sm:$0x3] %vm2408_vm0, %v2169_v2  ;;  %v635_v37 = vld [vmem:[#allocation8 + $0x4d0] sm:$0xff]  ;;  %v634_v38 = vld [vmem:[#allocation8 + $0x4c8] sm:$0xff]  ;;  %v632_v40 = vld [vmem:[#allocation8 + $0x4b8] sm:$0xff] }
  0xb9   : > { %794 = vmatprep.subr.mxu1 %v590_v57  ;;  %724 = vmatpush2.msra.mxu0 %v525_v58  ;;  %v631_v41 = vld [vmem:[#allocation8 + $0x4b0] sm:$0xff]  ;;  %v630_v42 = vld [vmem:[#allocation8 + $0x4a8] sm:$0xff]  ;;  %v628_v44 = vld [vmem:[#allocation8 + $0x498] sm:$0xff] }
  0xba   : > { %795 = vmatpush2.msra.mxu1 %v589_v59  ;;  %725 = vmatprep.subr.mxu0 %v524_v63  ;;  %v627_v1 = vld [vmem:[#allocation8 + $0x490] sm:$0xff]  ;;  %v626_v45 = vld [vmem:[#allocation8 + $0x488] sm:$0xff]  ;;  %v625_v46 = vld [vmem:[#allocation8 + $0x480] sm:$0xff] }
  0xbb   : > { %796 = vmatprep.subr.mxu1 %v588_v3  ;;  %726 = vmatpush2.msra.mxu0 %v523_v5  ;;  %v624_v47 = vld [vmem:[#allocation8 + $0x478] sm:$0xff]  ;;  %v623_v48 = vld [vmem:[#allocation8 + $0x470] sm:$0xff]  ;;  %v622_v49 = vld [vmem:[#allocation8 + $0x468] sm:$0xff] }
  0xbc   : > { %797 = vmatpush2.msra.mxu1 %v587_v6  ;;  %727 = vmatprep.subr.mxu0 %v522_v7  ;;  %v621_v50 = vld [vmem:[#allocation8 + $0x460] sm:$0xff]  ;;  %v620_v51 = vld [vmem:[#allocation8 + $0x458] sm:$0xff]  ;;  %v619_v52 = vld [vmem:[#allocation8 + $0x450] sm:$0xff] }
  0xbd   : > { %798 = vmatprep.subr.mxu1 %v586_v8  ;;  %728 = vmatpush2.msra.mxu0 %v521_v9  ;;  %v618_v53 = vld [vmem:[#allocation8 + $0x448] sm:$0xff]  ;;  %v615_v56 = vld [vmem:[#allocation8 + $0x430] sm:$0xff]  ;;  %v613_v58 = vld [vmem:[#allocation8 + $0x420] sm:$0xff] }
  0xbe   : > { %799 = vmatpush2.msra.mxu1 %v585_v10  ;;  %729 = vmatprep.subr.mxu0 %v520_v11  ;;  %v614_v57 = vld [vmem:[#allocation8 + $0x428] sm:$0xff]  ;;  %v612_v59 = vld [vmem:[#allocation8 + $0x418] sm:$0xff]  ;;  %v611_v60 = vld [vmem:[#allocation8 + $0x410] sm:$0xff] }
  0xbf   : > { %800 = vmatprep.subr.mxu1 %v584_v12  ;;  %730 = vmatpush2.msra.mxu0 %v519_v13  ;;  %v610_v61 = vld [vmem:[#allocation8 + $0x408] sm:$0xff]  ;;  %v609_v62 = vld [vmem:[#allocation8 + $0x400] sm:$0xff]  ;;  %v672_v63 = vld [vmem:[#allocation8 + $0x5f8] sm:$0xff] }
  0xc0   : > { %801 = vmatpush2.msra.mxu1 %v583_v14  ;;  %731 = vmatprep.subr.mxu0 %v518_v15  ;;  %v671_v3 = vld [vmem:[#allocation8 + $0x5f0] sm:$0xff]  ;;  %v670_v4 = vld [vmem:[#allocation8 + $0x5e8] sm:$0xff]  ;;  %v669_v5 = vld [vmem:[#allocation8 + $0x5e0] sm:$0xff] }
  0xc1   : > { %802 = vmatprep.subr.mxu1 %v582_v16  ;;  %732 = vmatpush2.msra.mxu0 %v517_v17  ;;  %v668_v6 = vld [vmem:[#allocation8 + $0x5d8] sm:$0xff]  ;;  %v667_v7 = vld [vmem:[#allocation8 + $0x5d0] sm:$0xff]  ;;  %v666_v8 = vld [vmem:[#allocation8 + $0x5c8] sm:$0xff] }
  0xc2   : > { %803 = vmatpush2.msra.mxu1 %v581_v18  ;;  %733 = vmatprep.subr.mxu0 %v516_v19  ;;  %v665_v9 = vld [vmem:[#allocation8 + $0x5c0] sm:$0xff]  ;;  %v664_v10 = vld [vmem:[#allocation8 + $0x5b8] sm:$0xff]  ;;  %v663_v11 = vld [vmem:[#allocation8 + $0x5b0] sm:$0xff] }
  0xc3   : > { %804 = vmatprep.subr.mxu1 %v580_v20  ;;  %734 = vmatpush2.msra.mxu0 %v515_v23  ;;  %v662_v12 = vld [vmem:[#allocation8 + $0x5a8] sm:$0xff]  ;;  %v661_v13 = vld [vmem:[#allocation8 + $0x5a0] sm:$0xff]  ;;  %v660_v14 = vld [vmem:[#allocation8 + $0x598] sm:$0xff] }
  0xc4   : > { %805 = vmatpush2.msra.mxu1 %v579_v24  ;;  %735 = vmatprep.subr.mxu0 %v514_v25  ;;  %v659_v15 = vld [vmem:[#allocation8 + $0x590] sm:$0xff]  ;;  %v658_v16 = vld [vmem:[#allocation8 + $0x588] sm:$0xff]  ;;  %v657_v17 = vld [vmem:[#allocation8 + $0x580] sm:$0xff] }
  0xc5   : > { %806 = vmatprep.subr.mxu1 %v578_v26  ;;  %736 = vmatpush2.msra.mxu0 %v513_v28  ;;  %v656_v18 = vld [vmem:[#allocation8 + $0x578] sm:$0xff]  ;;  %v655_v19 = vld [vmem:[#allocation8 + $0x570] sm:$0xff]  ;;  %v654_v20 = vld [vmem:[#allocation8 + $0x568] sm:$0xff] }
  0xc6   : > { %737 = vmatprep.mubr.f32.mxu0 %v476_v21  ;;  %807 = vmatpush2.msra.mxu1 %v577_v29  ;;  %v653_v21 = vld [vmem:[#allocation8 + $0x560] sm:$0xff]  ;;  %v651_v23 = vld [vmem:[#allocation8 + $0x550] sm:$0xff]  ;;  %v650_v24 = vld [vmem:[#allocation8 + $0x548] sm:$0xff] }
  0xc7   : > { %808 = vmatprep.mubr.f32.mxu1 %v2432_v54  ;;  %738 = vmatmul.mubr.f32.vlgmr.msra.gmra.mxu0 %v475_v22  ;;  %v617_v54 = vld [vmem:[#allocation8 + $0x440] sm:$0xff]  ;;  %v652_v22 = vld [vmem:[#allocation8 + $0x558] sm:$0xff]  ;;  %v647_v28 = vld [vmem:[#allocation8 + $0x530] sm:$0xff] }
  0xc8   : > { %809 = vmatmul.mubr.f32.vlgmr.msra.gmra.mxu1 %v2434_v55  ;;  %815 = vmatprep.subr.mxu0 %v640_v30  ;;  %v616_v55 = vld [vmem:[#allocation8 + $0x438] sm:$0xff]  ;;  %v649_v25 = vld [vmem:[#allocation8 + $0x540] sm:$0xff]  ;;  %v646_v29 = vld [vmem:[#allocation8 + $0x528] sm:$0xff] }
  0xc9   : > { %879 = vmatprep.mubr.f32.mxu0 %v480_v33  ;;  %816 = vmatpush1.msra.mxu0 %v639_v31  ;;  %v648_v26 = vld [vmem:[#allocation8 + $0x538] sm:$0xff]  ;;  %v645_v30 = vld [vmem:[#allocation8 + $0x520] sm:$0xff]  ;;  %v642_v33 = vld [vmem:[#allocation8 + $0x508] sm:$0xff] }
  0xca   : > { %817 = vmatprep.subr.mxu0 %v638_v32  ;;  %v644_v31 = vld [vmem:[#allocation8 + $0x518] sm:$0xff]  ;;  %v643_v32 = vld [vmem:[#allocation8 + $0x510] sm:$0xff] }
  0xcb   : > { %818 = vmatpush1.msra.mxu0 %v637_v35  ;;  %v641_v35 = vld [vmem:[#allocation8 + $0x500] sm:$0xff] }
  0xcc   : > { %819 = vmatprep.subr.mxu0 %v636_v36  ;;  %v1025_v36 = vld [vmem:[#allocation9 + $0x2f8] sm:$0xff] }
  0xcd   : > { %820 = vmatpush1.msra.mxu0 %v635_v37  ;;  %v961_v37 = vld [vmem:[#allocation9 + $0xf8] sm:$0xff] }
  0xce   : > { %821 = vmatprep.subr.mxu0 %v634_v38  ;;  %v1024_v38 = vld [vmem:[#allocation9 + $0x2f0] sm:$0xff]  ;;  %1134 = vmatprep.subr.mxu1 %v961_v37  ;;  %v994_v37 = vld [vmem:[#allocation9 + $0x200] sm:$0xff] }
  0xcf   : > { %822 = vmatpush1.msra.mxu0 %v633_v39  ;;  %v960_v39 = vld [vmem:[#allocation9 + $0xf0] sm:$0xff] }
  0xd0   : > { %823 = vmatprep.subr.mxu0 %v632_v40  ;;  %v1023_v40 = vld [vmem:[#allocation9 + $0x2e8] sm:$0xff]  ;;  %1135 = vmatpush1.msra.mxu1 %v960_v39  ;;  %v1057_v39 = vld [vmem:[#allocation9 + $0x3f8] sm:$0xff] }
  0xd1   : > { %824 = vmatpush1.msra.mxu0 %v631_v41  ;;  %v959_v41 = vld [vmem:[#allocation9 + $0xe8] sm:$0xff] }
  0xd2   : > { %825 = vmatprep.subr.mxu0 %v630_v42  ;;  %v1022_v42 = vld [vmem:[#allocation9 + $0x2e0] sm:$0xff]  ;;  %1136 = vmatprep.subr.mxu1 %v959_v41  ;;  %v1056_v41 = vld [vmem:[#allocation9 + $0x3f0] sm:$0xff] }
  0xd3   : > { %826 = vmatpush1.msra.mxu0 %v629_v43  ;;  %v958_v43 = vld [vmem:[#allocation9 + $0xe0] sm:$0xff] }
  0xd4   : > { %827 = vmatprep.subr.mxu0 %v628_v44  ;;  %v1021_v44 = vld [vmem:[#allocation9 + $0x2d8] sm:$0xff]  ;;  %1137 = vmatpush1.msra.mxu1 %v958_v43  ;;  %v1055_v43 = vld [vmem:[#allocation9 + $0x3e8] sm:$0xff] }
  0xd5   : > { %828 = vmatpush1.msra.mxu0 %v627_v1  ;;  %v957_v1 = vld [vmem:[#allocation9 + $0xd8] sm:$0xff] }
  0xd6   : > { %829 = vmatprep.subr.mxu0 %v626_v45  ;;  %v1020_v45 = vld [vmem:[#allocation9 + $0x2d0] sm:$0xff]  ;;  %1138 = vmatprep.subr.mxu1 %v957_v1  ;;  %v1054_v1 = vld [vmem:[#allocation9 + $0x3e0] sm:$0xff] }
  0xd7   : > { %830 = vmatpush1.msra.mxu0 %v625_v46  ;;  %v956_v46 = vld [vmem:[#allocation9 + $0xd0] sm:$0xff] }
  0xd8   : > { %831 = vmatprep.subr.mxu0 %v624_v47  ;;  %v955_v47 = vld [vmem:[#allocation9 + $0xc8] sm:$0xff]  ;;  %1139 = vmatpush1.msra.mxu1 %v956_v46  ;;  %v1053_v46 = vld [vmem:[#allocation9 + $0x3d8] sm:$0xff] }
  0xd9   : > { %832 = vmatpush1.msra.mxu0 %v623_v48  ;;  %v1018_v48 = vld [vmem:[#allocation9 + $0x2c0] sm:$0xff]  ;;  %1140 = vmatprep.subr.mxu1 %v955_v47  ;;  %v1052_v47 = vld [vmem:[#allocation9 + $0x3d0] sm:$0xff] }
  0xda   : > { %833 = vmatprep.subr.mxu0 %v622_v49  ;;  %v954_v49 = vld [vmem:[#allocation9 + $0xc0] sm:$0xff] }
  0xdb   : > { %834 = vmatpush1.msra.mxu0 %v621_v50  ;;  %v1017_v50 = vld [vmem:[#allocation9 + $0x2b8] sm:$0xff]  ;;  %1141 = vmatpush1.msra.mxu1 %v954_v49  ;;  %v1051_v49 = vld [vmem:[#allocation9 + $0x3c8] sm:$0xff] }
  0xdc   : > { %835 = vmatprep.subr.mxu0 %v620_v51  ;;  %v953_v51 = vld [vmem:[#allocation9 + $0xb8] sm:$0xff] }
  0xdd   : > { %836 = vmatpush1.msra.mxu0 %v619_v52  ;;  %v1016_v52 = vld [vmem:[#allocation9 + $0x2b0] sm:$0xff]  ;;  %1142 = vmatprep.subr.mxu1 %v953_v51  ;;  %v1050_v51 = vld [vmem:[#allocation9 + $0x3c0] sm:$0xff] }
  0xde   : > { %837 = vmatprep.subr.mxu0 %v618_v53  ;;  %v952_v53 = vld [vmem:[#allocation9 + $0xb0] sm:$0xff] }
  0xdf   : > { %838 = vmatpush1.msra.mxu0 %v617_v54  ;;  %v1015_v54 = vld [vmem:[#allocation9 + $0x2a8] sm:$0xff]  ;;  %1143 = vmatpush1.msra.mxu1 %v952_v53  ;;  %v1049_v53 = vld [vmem:[#allocation9 + $0x3b8] sm:$0xff] }
  0xe0   : > { %839 = vmatprep.subr.mxu0 %v616_v55  ;;  %v951_v55 = vld [vmem:[#allocation9 + $0xa8] sm:$0xff] }
  0xe1   : > { %840 = vmatpush1.msra.mxu0 %v615_v56  ;;  %v1014_v56 = vld [vmem:[#allocation9 + $0x2a0] sm:$0xff]  ;;  %1144 = vmatprep.subr.mxu1 %v951_v55  ;;  %v1048_v55 = vld [vmem:[#allocation9 + $0x3b0] sm:$0xff] }
  0xe2   : > { %841 = vmatprep.subr.mxu0 %v614_v57  ;;  %v950_v57 = vld [vmem:[#allocation9 + $0xa0] sm:$0xff] }
  0xe3   : > { %842 = vmatpush1.msra.mxu0 %v613_v58  ;;  %v1013_v58 = vld [vmem:[#allocation9 + $0x298] sm:$0xff]  ;;  %1145 = vmatpush1.msra.mxu1 %v950_v57  ;;  %v1047_v57 = vld [vmem:[#allocation9 + $0x3a8] sm:$0xff] }
  0xe4   : > { %843 = vmatprep.subr.mxu0 %v612_v59  ;;  %v949_v59 = vld [vmem:[#allocation9 + $0x98] sm:$0xff] }
  0xe5   : > { %844 = vmatpush1.msra.mxu0 %v611_v60  ;;  %v1012_v60 = vld [vmem:[#allocation9 + $0x290] sm:$0xff]  ;;  %1146 = vmatprep.subr.mxu1 %v949_v59  ;;  %v1046_v59 = vld [vmem:[#allocation9 + $0x3a0] sm:$0xff] }
  0xe6   : > { %845 = vmatprep.subr.mxu0 %v610_v61  ;;  %v948_v61 = vld [vmem:[#allocation9 + $0x90] sm:$0xff] }
  0xe7   : > { %846 = vmatpush1.msra.mxu0 %v609_v62  ;;  %v1011_v62 = vld [vmem:[#allocation9 + $0x288] sm:$0xff]  ;;  %1147 = vmatpush1.msra.mxu1 %v948_v61  ;;  %v1045_v61 = vld [vmem:[#allocation9 + $0x398] sm:$0xff] }
  0xe8   : > { %847 = vmatprep.subr.mxu0 %v672_v63  ;;  %v947_v63 = vld [vmem:[#allocation9 + $0x88] sm:$0xff] }
  0xe9   : > { %848 = vmatpush2.msra.mxu0 %v671_v3  ;;  %v1010_v3 = vld [vmem:[#allocation9 + $0x280] sm:$0xff]  ;;  %1148 = vmatprep.subr.mxu1 %v947_v63  ;;  %v1044_v63 = vld [vmem:[#allocation9 + $0x390] sm:$0xff] }
  0xea   : > { %849 = vmatprep.subr.mxu0 %v670_v4  ;;  %v946_v4 = vld [vmem:[#allocation9 + $0x80] sm:$0xff] }
  0xeb   : > { %850 = vmatpush2.msra.mxu0 %v669_v5  ;;  %v1009_v5 = vld [vmem:[#allocation9 + $0x278] sm:$0xff]  ;;  %1149 = vmatpush1.msra.mxu1 %v946_v4  ;;  %v1043_v4 = vld [vmem:[#allocation9 + $0x388] sm:$0xff] }
  0xec   : > { %851 = vmatprep.subr.mxu0 %v668_v6  ;;  %v945_v6 = vld [vmem:[#allocation9 + $0x78] sm:$0xff] }
  0xed   : > { %852 = vmatpush2.msra.mxu0 %v667_v7  ;;  %v1008_v7 = vld [vmem:[#allocation9 + $0x270] sm:$0xff]  ;;  %1150 = vmatprep.subr.mxu1 %v945_v6  ;;  %v1041_v6 = vld [vmem:[#allocation9 + $0x378] sm:$0xff] }
  0xee   : > { %853 = vmatprep.subr.mxu0 %v666_v8  ;;  %v944_v8 = vld [vmem:[#allocation9 + $0x70] sm:$0xff] }
  0xef   : > { %854 = vmatpush2.msra.mxu0 %v665_v9  ;;  %v1007_v9 = vld [vmem:[#allocation9 + $0x268] sm:$0xff]  ;;  %1151 = vmatpush1.msra.mxu1 %v944_v8 }
  0xf0   : > { %855 = vmatprep.subr.mxu0 %v664_v10  ;;  %v943_v10 = vld [vmem:[#allocation9 + $0x68] sm:$0xff] }
  0xf1   : > { %856 = vmatpush2.msra.mxu0 %v663_v11  ;;  %v1006_v11 = vld [vmem:[#allocation9 + $0x260] sm:$0xff]  ;;  %1152 = vmatprep.subr.mxu1 %v943_v10  ;;  %v1039_v8 = vld [vmem:[#allocation9 + $0x368] sm:$0xff]  ;;  %v1037_v10 = vld [vmem:[#allocation9 + $0x358] sm:$0xff] }
  0xf2   : > { %857 = vmatprep.subr.mxu0 %v662_v12  ;;  %v942_v12 = vld [vmem:[#allocation9 + $0x60] sm:$0xff] }
  0xf3   : > { %858 = vmatpush2.msra.mxu0 %v661_v13  ;;  %v1005_v13 = vld [vmem:[#allocation9 + $0x258] sm:$0xff]  ;;  %1153 = vmatpush1.msra.mxu1 %v942_v12  ;;  %v1035_v12 = vld [vmem:[#allocation9 + $0x348] sm:$0xff] }
  0xf4   : > { %859 = vmatprep.subr.mxu0 %v660_v14  ;;  %v941_v14 = vld [vmem:[#allocation9 + $0x58] sm:$0xff] }
  0xf5   : > { %860 = vmatpush2.msra.mxu0 %v659_v15  ;;  %v1004_v15 = vld [vmem:[#allocation9 + $0x250] sm:$0xff]  ;;  %1154 = vmatprep.subr.mxu1 %v941_v14  ;;  %v1034_v14 = vld [vmem:[#allocation9 + $0x340] sm:$0xff] }
  0xf6   : > { %861 = vmatprep.subr.mxu0 %v658_v16  ;;  %v940_v16 = vld [vmem:[#allocation9 + $0x50] sm:$0xff] }
  0xf7   : > { %862 = vmatpush2.msra.mxu0 %v657_v17  ;;  %v1003_v17 = vld [vmem:[#allocation9 + $0x248] sm:$0xff]  ;;  %1155 = vmatpush1.msra.mxu1 %v940_v16  ;;  %v1033_v16 = vld [vmem:[#allocation9 + $0x338] sm:$0xff] }
  0xf8   : > { %863 = vmatprep.subr.mxu0 %v656_v18  ;;  %v939_v18 = vld [vmem:[#allocation9 + $0x48] sm:$0xff] }
  0xf9   : > { %864 = vmatpush2.msra.mxu0 %v655_v19  ;;  %v1002_v19 = vld [vmem:[#allocation9 + $0x240] sm:$0xff]  ;;  %1156 = vmatprep.subr.mxu1 %v939_v18  ;;  %v1032_v18 = vld [vmem:[#allocation9 + $0x330] sm:$0xff] }
  0xfa   : > { %865 = vmatprep.subr.mxu0 %v654_v20  ;;  %v938_v20 = vld [vmem:[#allocation9 + $0x40] sm:$0xff] }
  0xfb   : > { %866 = vmatpush2.msra.mxu0 %v653_v21  ;;  %v1001_v21 = vld [vmem:[#allocation9 + $0x238] sm:$0xff]  ;;  %1157 = vmatpush1.msra.mxu1 %v938_v20  ;;  %v1031_v20 = vld [vmem:[#allocation9 + $0x328] sm:$0xff] }
  0xfc   : > { %867 = vmatprep.subr.mxu0 %v652_v22  ;;  %v937_v22 = vld [vmem:[#allocation9 + $0x38] sm:$0xff] }
  0xfd   : > { %868 = vmatpush2.msra.mxu0 %v651_v23  ;;  %v1000_v23 = vld [vmem:[#allocation9 + $0x230] sm:$0xff]  ;;  %1158 = vmatprep.subr.mxu1 %v937_v22  ;;  %v1030_v22 = vld [vmem:[#allocation9 + $0x320] sm:$0xff] }
  0xfe   : > { %869 = vmatprep.subr.mxu0 %v650_v24  ;;  %v936_v24 = vld [vmem:[#allocation9 + $0x30] sm:$0xff] }
  0xff   : > { %870 = vmatpush2.msra.mxu0 %v649_v25  ;;  %v999_v25 = vld [vmem:[#allocation9 + $0x228] sm:$0xff]  ;;  %1159 = vmatpush1.msra.mxu1 %v936_v24  ;;  %v1029_v24 = vld [vmem:[#allocation9 + $0x318] sm:$0xff] }
 0x100   : > { %871 = vmatprep.subr.mxu0 %v648_v26  ;;  %v935_v26 = vld [vmem:[#allocation9 + $0x28] sm:$0xff] }
 0x101   : > { %872 = vmatpush2.msra.mxu0 %v647_v28  ;;  %v998_v28 = vld [vmem:[#allocation9 + $0x220] sm:$0xff]  ;;  %1160 = vmatprep.subr.mxu1 %v935_v26  ;;  %v1028_v26 = vld [vmem:[#allocation9 + $0x310] sm:$0xff] }
 0x102   : > { %873 = vmatprep.subr.mxu0 %v646_v29  ;;  %v934_v29 = vld [vmem:[#allocation9 + $0x20] sm:$0xff] }
 0x103   : > { %874 = vmatpush2.msra.mxu0 %v645_v30  ;;  %v997_v30 = vld [vmem:[#allocation9 + $0x218] sm:$0xff]  ;;  %1161 = vmatpush1.msra.mxu1 %v934_v29  ;;  %v1027_v29 = vld [vmem:[#allocation9 + $0x308] sm:$0xff] }
 0x104   : > { %875 = vmatprep.subr.mxu0 %v644_v31  ;;  %v933_v31 = vld [vmem:[#allocation9 + $0x18] sm:$0xff] }
 0x105   : > { %876 = vmatpush2.msra.mxu0 %v643_v32  ;;  %v996_v32 = vld [vmem:[#allocation9 + $0x210] sm:$0xff]  ;;  %1162 = vmatprep.subr.mxu1 %v933_v31  ;;  %v1026_v31 = vld [vmem:[#allocation9 + $0x300] sm:$0xff] }
 0x106   : > { %877 = vmatprep.subr.mxu0 %v642_v33  ;;  %v932_v33 = vld [vmem:[#allocation9 + $0x10] sm:$0xff] }
 0x107   : > { %878 = vmatpush2.msra.mxu0 %v641_v35  ;;  %v995_v35 = vld [vmem:[#allocation9 + $0x208] sm:$0xff]  ;;  %1163 = vmatpush1.msra.mxu1 %v932_v33  ;;  %v969_v33 = vld [vmem:[#allocation9 + $0x138] sm:$0xff] }
 0x108   : > { %880 = vmatmul.mubr.f32.vlgmr.msra.gmra.mxu0 %v2445_v34  ;;  %1205 = vmatprep.subr.mxu0 %v1025_v36  ;;  %v1019_v34 = vld [vmem:[#allocation9 + $0x2c8] sm:$0xff] }
 0x109   : > { %1206 = vmatpush1.msra.mxu0 %v1024_v38  ;;  %v931_v36 = vld [vmem:[#allocation9 + $0x8] sm:$0xff]  ;;  %v930_v38 = vld [vmem:[#allocation9] sm:$0xff] }
 0x10a   : > { %1207 = vmatprep.subr.mxu0 %v1023_v40  ;;  %v993_v40 = vld [vmem:[#allocation9 + $0x1f8] sm:$0xff]  ;;  %1164 = vmatprep.subr.mxu1 %v931_v36  ;;  %v967_v36 = vld [vmem:[#allocation9 + $0x128] sm:$0xff] }
 0x10b   : > { %1208 = vmatpush1.msra.mxu0 %v1022_v42  ;;  %v992_v42 = vld [vmem:[#allocation9 + $0x1f0] sm:$0xff]  ;;  %1165 = vmatpush1.msra.mxu1 %v930_v38  ;;  %v965_v38 = vld [vmem:[#allocation9 + $0x118] sm:$0xff] }
 0x10c   : > { %1209 = vmatprep.subr.mxu0 %v1021_v44  ;;  %v991_v44 = vld [vmem:[#allocation9 + $0x1e8] sm:$0xff]  ;;  %1166 = vmatprep.subr.mxu1 %v993_v40 }
 0x10d   : > { %1210 = vmatpush1.msra.mxu0 %v1020_v45  ;;  %v990_v45 = vld [vmem:[#allocation9 + $0x1e0] sm:$0xff]  ;;  %1167 = vmatpush2.msra.mxu1 %v992_v42  ;;  %v963_v40 = vld [vmem:[#allocation9 + $0x108] sm:$0xff]  ;;  %v1089_v42 = vld [vmem:[#allocation9 + $0x4f8] sm:$0xff] }
 0x10e   : > { %1211 = vmatprep.subr.mxu0 %v1019_v34  ;;  %v989_v34 = vld [vmem:[#allocation9 + $0x1d8] sm:$0xff]  ;;  %1168 = vmatprep.subr.mxu1 %v991_v44 }
 0x10f   : > { %1212 = vmatpush1.msra.mxu0 %v1018_v48  ;;  %v988_v48 = vld [vmem:[#allocation9 + $0x1d0] sm:$0xff]  ;;  %1169 = vmatpush2.msra.mxu1 %v990_v45 }
 0x110   : > { %1213 = vmatprep.subr.mxu0 %v1017_v50  ;;  %v987_v50 = vld [vmem:[#allocation9 + $0x1c8] sm:$0xff]  ;;  %1170 = vmatprep.subr.mxu1 %v989_v34 }
 0x111   : > { %1214 = vmatpush1.msra.mxu0 %v1016_v52  ;;  %v986_v52 = vld [vmem:[#allocation9 + $0x1c0] sm:$0xff]  ;;  %1171 = vmatpush2.msra.mxu1 %v988_v48 }
 0x112   : > { %1215 = vmatprep.subr.mxu0 %v1015_v54  ;;  %v985_v54 = vld [vmem:[#allocation9 + $0x1b8] sm:$0xff]  ;;  %1172 = vmatprep.subr.mxu1 %v987_v50 }
 0x113   : > { %1216 = vmatpush1.msra.mxu0 %v1014_v56  ;;  %v984_v56 = vld [vmem:[#allocation9 + $0x1b0] sm:$0xff]  ;;  %1173 = vmatpush2.msra.mxu1 %v986_v52 }
 0x114   : > { %1217 = vmatprep.subr.mxu0 %v1013_v58  ;;  %v983_v58 = vld [vmem:[#allocation9 + $0x1a8] sm:$0xff]  ;;  %1174 = vmatprep.subr.mxu1 %v985_v54 }
 0x115   : > { %1218 = vmatpush1.msra.mxu0 %v1012_v60  ;;  %v982_v60 = vld [vmem:[#allocation9 + $0x1a0] sm:$0xff]  ;;  %1175 = vmatpush2.msra.mxu1 %v984_v56 }
 0x116   : > { %1219 = vmatprep.subr.mxu0 %v1011_v62  ;;  %v981_v62 = vld [vmem:[#allocation9 + $0x198] sm:$0xff]  ;;  %1176 = vmatprep.subr.mxu1 %v983_v58 }
 0x117   : > { %1220 = vmatpush1.msra.mxu0 %v1010_v3  ;;  %v980_v3 = vld [vmem:[#allocation9 + $0x190] sm:$0xff]  ;;  %1177 = vmatpush2.msra.mxu1 %v982_v60 }
 0x118   : > { %1221 = vmatprep.subr.mxu0 %v1009_v5  ;;  %1178 = vmatprep.subr.mxu1 %v981_v62  ;;  %v1042_v5 = vld [vmem:[#allocation9 + $0x380] sm:$0xff] }
 0x119   : > { %1222 = vmatpush1.msra.mxu0 %v1008_v7  ;;  %1179 = vmatpush2.msra.mxu1 %v980_v3  ;;  %v1040_v7 = vld [vmem:[#allocation9 + $0x370] sm:$0xff] }
 0x11a   : > { %1223 = vmatprep.subr.mxu0 %v1007_v9  ;;  %v1038_v9 = vld [vmem:[#allocation9 + $0x360] sm:$0xff] }
 0x11b   : > { %1224 = vmatpush1.msra.mxu0 %v1006_v11  ;;  %v1036_v11 = vld [vmem:[#allocation9 + $0x350] sm:$0xff] }
 0x11c   : > { %1225 = vmatprep.subr.mxu0 %v1005_v13  ;;  %v979_v13 = vld [vmem:[#allocation9 + $0x188] sm:$0xff] }
 0x11d   : > { %1226 = vmatpush1.msra.mxu0 %v1004_v15  ;;  %1180 = vmatprep.subr.mxu1 %v979_v13  ;;  %v978_v15 = vld [vmem:[#allocation9 + $0x180] sm:$0xff]  ;;  %v1079_v13 = vld [vmem:[#allocation9 + $0x4a8] sm:$0xff] }
 0x11e   : > { %1227 = vmatprep.subr.mxu0 %v1003_v17  ;;  %1181 = vmatpush2.msra.mxu1 %v978_v15  ;;  %v977_v17 = vld [vmem:[#allocation9 + $0x178] sm:$0xff] }
 0x11f   : > { %1228 = vmatpush1.msra.mxu0 %v1002_v19  ;;  %1182 = vmatprep.subr.mxu1 %v977_v17  ;;  %v976_v19 = vld [vmem:[#allocation9 + $0x170] sm:$0xff]  ;;  %v1077_v15 = vld [vmem:[#allocation9 + $0x498] sm:$0xff]  ;;  %v1075_v17 = vld [vmem:[#allocation9 + $0x488] sm:$0xff] }
 0x120   : > { %1229 = vmatprep.subr.mxu0 %v1001_v21  ;;  %1183 = vmatpush2.msra.mxu1 %v976_v19  ;;  %v975_v21 = vld [vmem:[#allocation9 + $0x168] sm:$0xff]  ;;  %v1073_v19 = vld [vmem:[#allocation9 + $0x478] sm:$0xff] }
 0x121   : > { %1230 = vmatpush1.msra.mxu0 %v1000_v23  ;;  %1184 = vmatprep.subr.mxu1 %v975_v21  ;;  %v974_v23 = vld [vmem:[#allocation9 + $0x160] sm:$0xff]  ;;  %v1071_v21 = vld [vmem:[#allocation9 + $0x468] sm:$0xff] }
 0x122   : > { %1231 = vmatprep.subr.mxu0 %v999_v25  ;;  %1185 = vmatpush2.msra.mxu1 %v974_v23  ;;  %v973_v25 = vld [vmem:[#allocation9 + $0x158] sm:$0xff] }
 0x123   : > { %1232 = vmatpush1.msra.mxu0 %v998_v28  ;;  %1186 = vmatprep.subr.mxu1 %v973_v25  ;;  %v972_v28 = vld [vmem:[#allocation9 + $0x150] sm:$0xff]  ;;  %v1069_v23 = vld [vmem:[#allocation9 + $0x458] sm:$0xff]  ;;  %v1067_v25 = vld [vmem:[#allocation9 + $0x448] sm:$0xff] }
 0x124   : > { %1233 = vmatprep.subr.mxu0 %v997_v30  ;;  %1187 = vmatpush2.msra.mxu1 %v972_v28  ;;  %v971_v30 = vld [vmem:[#allocation9 + $0x148] sm:$0xff]  ;;  %v1065_v28 = vld [vmem:[#allocation9 + $0x438] sm:$0xff] }
 0x125   : > { %1234 = vmatpush1.msra.mxu0 %v996_v32  ;;  %1188 = vmatprep.subr.mxu1 %v971_v30  ;;  %v970_v32 = vld [vmem:[#allocation9 + $0x140] sm:$0xff]  ;;  %v1063_v30 = vld [vmem:[#allocation9 + $0x428] sm:$0xff] }
 0x126   : > { %1235 = vmatprep.subr.mxu0 %v995_v35  ;;  %1189 = vmatpush2.msra.mxu1 %v970_v32  ;;  %v968_v35 = vld [vmem:[#allocation9 + $0x130] sm:$0xff]  ;;  %v1061_v32 = vld [vmem:[#allocation9 + $0x418] sm:$0xff] }
 0x127   : > { %1236 = vmatpush1.msra.mxu0 %v994_v37  ;;  %1190 = vmatprep.subr.mxu1 %v969_v33  ;;  %v966_v37 = vld [vmem:[#allocation9 + $0x120] sm:$0xff]  ;;  %v1060_v33 = vld [vmem:[#allocation9 + $0x410] sm:$0xff] }
 0x128   : > { %1237 = vmatprep.subr.mxu0 %v1057_v39  ;;  %1191 = vmatpush2.msra.mxu1 %v968_v35  ;;  %v964_v39 = vld [vmem:[#allocation9 + $0x110] sm:$0xff]  ;;  %v1059_v35 = vld [vmem:[#allocation9 + $0x408] sm:$0xff] }
 0x129   : > { %1238 = vmatpush2.msra.mxu0 %v1056_v41  ;;  %1192 = vmatprep.subr.mxu1 %v967_v36  ;;  %v962_v41 = vld [vmem:[#allocation9 + $0x100] sm:$0xff] }
 0x12a   : > { %1239 = vmatprep.subr.mxu0 %v1055_v43  ;;  %1193 = vmatpush2.msra.mxu1 %v966_v37  ;;  %v1058_v36 = vld [vmem:[#allocation9 + $0x400] sm:$0xff]  ;;  %v1121_v37 = vld [vmem:[#allocation9 + $0x5f8] sm:$0xff] }
 0x12b   : > { %1240 = vmatpush2.msra.mxu0 %v1054_v1  ;;  %1194 = vmatprep.subr.mxu1 %v965_v38  ;;  %v888_v1 = vld [vmem:[%s2507_s4] sm:$0x3]  ;;  %v1120_v38 = vld [vmem:[#allocation9 + $0x5f0] sm:$0xff] }
 0x12c   : > { %1241 = vmatprep.subr.mxu0 %v1053_v46  ;;  %1195 = vmatpush2.msra.mxu1 %v964_v39  ;;  %v1119_v39 = vld [vmem:[#allocation9 + $0x5e8] sm:$0xff] }
 0x12d   : > { %1242 = vmatpush2.msra.mxu0 %v1052_v47  ;;  %1196 = vmatprep.subr.mxu1 %v963_v40  ;;  %v893_v47 = vrot.slane %v888_v1, %v2419_v27  ;;  %v1118_v40 = vld [vmem:[#allocation9 + $0x5e0] sm:$0xff] }
 0x12e   : > { %1243 = vmatprep.subr.mxu0 %v1051_v49  ;;  %1197 = vmatpush2.msra.mxu1 %v962_v41  ;;  %v1117_v41 = vld [vmem:[#allocation9 + $0x5d8] sm:$0xff] }
 0x12f   : > { %1244 = vmatpush2.msra.mxu0 %v1050_v51  ;;  %1276 = vmatprep.subr.mxu1 %v1089_v42  ;;  %v897_v51 = vrot.slane %v888_v1, %v2421_v0  ;;  %v1116_v42 = vld [vmem:[#allocation9 + $0x5d0] sm:$0xff]  ;;  %v1113_v1 = vld [vmem:[#allocation9 + $0x5b8] sm:$0xff] }
 0x130   : > { %1245 = vmatprep.subr.mxu0 %v1049_v53 }
 0x131   : > { %1246 = vmatpush2.msra.mxu0 %v1048_v55 }
 0x132   : > { %1247 = vmatprep.subr.mxu0 %v1047_v57 }
 0x133   : > { %1248 = vmatpush2.msra.mxu0 %v1046_v59 }
 0x134   : > { %1249 = vmatprep.subr.mxu0 %v1045_v61 }
 0x135   : > { %1250 = vmatpush2.msra.mxu0 %v1044_v63  ;;  %v1088_v63 = vld [vmem:[#allocation9 + $0x4f0] sm:$0xff] }
 0x136   : > { %1251 = vmatprep.subr.mxu0 %v1043_v4  ;;  %v1087_v4 = vld [vmem:[#allocation9 + $0x4e8] sm:$0xff] }
 0x137   : > { %1252 = vmatpush2.msra.mxu0 %v1042_v5 }
 0x138   : > { %1253 = vmatprep.subr.mxu0 %v1041_v6  ;;  %v1086_v6 = vld [vmem:[#allocation9 + $0x4e0] sm:$0xff] }
 0x139   : > { %1254 = vmatpush2.msra.mxu0 %v1040_v7  ;;  %v1085_v7 = vld [vmem:[#allocation9 + $0x4d8] sm:$0xff] }
 0x13a   : > { %1255 = vmatprep.subr.mxu0 %v1039_v8  ;;  %v1084_v8 = vld [vmem:[#allocation9 + $0x4d0] sm:$0xff] }
 0x13b   : > { %1256 = vmatpush2.msra.mxu0 %v1038_v9  ;;  %v1083_v9 = vld [vmem:[#allocation9 + $0x4c8] sm:$0xff] }
 0x13c   : > { %1257 = vmatprep.subr.mxu0 %v1037_v10  ;;  %v1082_v10 = vld [vmem:[#allocation9 + $0x4c0] sm:$0xff] }
 0x13d   : > { %1258 = vmatpush2.msra.mxu0 %v1036_v11  ;;  %v1081_v11 = vld [vmem:[#allocation9 + $0x4b8] sm:$0xff] }
 0x13e   : > { %1259 = vmatprep.subr.mxu0 %v1035_v12  ;;  %v1080_v12 = vld [vmem:[#allocation9 + $0x4b0] sm:$0xff] }
 0x13f   : > { %1260 = vmatpush2.msra.mxu0 %v1034_v14  ;;  %v1078_v14 = vld [vmem:[#allocation9 + $0x4a0] sm:$0xff] }
 0x140   : > { %1261 = vmatprep.subr.mxu0 %v1033_v16  ;;  %v1076_v16 = vld [vmem:[#allocation9 + $0x490] sm:$0xff] }
 0x141   : > { %1262 = vmatpush2.msra.mxu0 %v1032_v18  ;;  %v1074_v18 = vld [vmem:[#allocation9 + $0x480] sm:$0xff] }
 0x142   : > { %1263 = vmatprep.subr.mxu0 %v1031_v20  ;;  %v1072_v20 = vld [vmem:[#allocation9 + $0x470] sm:$0xff] }
 0x143   : > { %1264 = vmatpush2.msra.mxu0 %v1030_v22  ;;  %v1070_v22 = vld [vmem:[#allocation9 + $0x460] sm:$0xff] }
 0x144   : > { %1265 = vmatprep.subr.mxu0 %v1029_v24  ;;  %v1068_v24 = vld [vmem:[#allocation9 + $0x450] sm:$0xff] }
 0x145   : > { %1266 = vmatpush2.msra.mxu0 %v1028_v26  ;;  %v1066_v26 = vld [vmem:[#allocation9 + $0x440] sm:$0xff] }
 0x146   : > { %1267 = vmatprep.subr.mxu0 %v1027_v29  ;;  %v1064_v29 = vld [vmem:[#allocation9 + $0x430] sm:$0xff] }
 0x147   : > { %1268 = vmatpush2.msra.mxu0 %v1026_v31  ;;  %v1062_v31 = vld [vmem:[#allocation9 + $0x420] sm:$0xff] }
 0x187   : > { %v739_v43 = vpop.f32.mrf.mxu0 }
 0x188   : > { %v810_v44 = vpop.f32.mrf.mxu1 }
 0x189   : > { %v741_v45 = vpop.f32.mrf.mxu0  ;;  %v811_v34 = vadd.f32 %v810_v44, %v739_v43  ;;  %v1115_v43 = vld [vmem:[#allocation9 + $0x5c8] sm:$0xff]  ;;  %v1114_v44 = vld [vmem:[#allocation9 + $0x5c0] sm:$0xff] }
 0x18a   : > { %v812_v46 = vpop.f32.mrf.mxu1 }
 0x18b   : > { %v813_v49 = vadd.f32 %v812_v46, %v741_v45  ;;  %v1112_v45 = vld [vmem:[#allocation9 + $0x5b0] sm:$0xff]  ;;  %v1111_v46 = vld [vmem:[#allocation9 + $0x5a8] sm:$0xff] }
 0x1c8   : > { %v881_v48 = vpop.f32.mrf.mxu0 }
 0x1c9   : > { %v882_v50 = vadd.f32 %v881_v48, %v811_v34  ;;  %v1110_v34 = vld [vmem:[#allocation9 + $0x5a0] sm:$0xff]  ;;  %v1108_v48 = vld [vmem:[#allocation9 + $0x590] sm:$0xff] }
 0x1ca   : > { %v883_v52 = vpop.f32.mrf.mxu0 }
 0x1cb   : > { %vm886_vm1 = vcmp.ge.f32.partialorder %v882_v50, 0.0  ;;  %v900_v53 = vmul.f32 %v893_v47, %v882_v50  ;;  %v884_v54 = vadd.f32 %v883_v52, %v813_v49  ;;  %v1109_v47 = vld [vmem:[#allocation9 + $0x598] sm:$0xff]  ;;  %v1107_v49 = vld [vmem:[#allocation9 + $0x588] sm:$0xff]  ;;  %v1104_v52 = vld [vmem:[#allocation9 + $0x570] sm:$0xff] }
 0x1cd   : > { %v902_v55 = vsel %vm886_vm1, %v882_v50, %v900_v53  ;;  %vm887_vm2 = vcmp.ge.f32.partialorder %v884_v54, 0.0  ;;  %v901_v56 = vmul.f32 %v897_v51, %v884_v54  ;;  %v1106_v50 = vld [vmem:[#allocation9 + $0x580] sm:$0xff]  ;;  %v1105_v51 = vld [vmem:[#allocation9 + $0x578] sm:$0xff]  ;;  %v1103_v53 = vld [vmem:[#allocation9 + $0x568] sm:$0xff] }
 0x1ce   : > { %v912_v57 = vrot.slane %v902_v55, 7  ;;  %v918_v58 = vrot.slane %v902_v55, 1 }
 0x1cf   : > { %v903_v59 = vsel %vm887_vm2, %v884_v54, %v901_v56  ;;  %v1102_v54 = vld [vmem:[#allocation9 + $0x560] sm:$0xff]  ;;  %v1100_v56 = vld [vmem:[#allocation9 + $0x550] sm:$0xff] }
 0x1d0   : > { %916 = vst [vmem:[#allocation2] sm:$0xfe] %v912_v57  ;;  %922 = vst [vmem:[#allocation2 + $0x20] sm:$0x7f] %v918_v58  ;;  %v913_v60 = vrot.slane %v903_v59, 7  ;;  %v919_v61 = vrot.slane %v903_v59, 1  ;;  %1269 = vmatprep.mubr.f32.mxu0 %v903_v59 }
 0x1d1   : > { %1270 = vmatmul.mubr.f32.vlgmr.msra.gmra.mxu0 %v902_v55  ;;  %v1101_v55 = vld [vmem:[#allocation9 + $0x558] sm:$0xff]  ;;  %v1099_v57 = vld [vmem:[#allocation9 + $0x548] sm:$0xff]  ;;  %v1098_v58 = vld [vmem:[#allocation9 + $0x540] sm:$0xff] }
 0x1d2   : > { %917 = vst [vmem:[#allocation2 + $0x8] sm:$0xfe] %v913_v60  ;;  %923 = vst [vmem:[#allocation2 + $0x28] sm:$0x7f] %v919_v61  ;;  %v1097_v59 = vld [vmem:[#allocation9 + $0x538] sm:$0xff]  ;;  %v1096_v60 = vld [vmem:[#allocation9 + $0x530] sm:$0xff] }
 0x1d3   : > { %v1095_v61 = vld [vmem:[#allocation9 + $0x528] sm:$0xff] }
 0x1d7   : > { %v924_v3 = vld [vmem:[#allocation2] sm:$0xff] }
 0x1d9   : > { %v925_v62 = vld [vmem:[#allocation2 + $0x8] sm:$0xff] }
 0x1da   : > { %1198 = vmatprep.mubr.f32.mxu1 %v925_v62  ;;  %v929_v5 = vld [vmem:[#allocation2 + $0x28] sm:$0xff]  ;;  %v1094_v62 = vld [vmem:[#allocation9 + $0x520] sm:$0xff] }
 0x1db   : > { %1199 = vmatmul.mubr.f32.vlgmr.msra.gmra.mxu1 %v924_v3  ;;  %v1092_v3 = vld [vmem:[#allocation9 + $0x510] sm:$0xff] }
 0x1dc   : > { %1277 = vmatpush1.msra.mxu1 %v1088_v63  ;;  %1340 = vmatprep.mubr.f32.mxu1 %v929_v5  ;;  %v1093_v63 = vld [vmem:[#allocation9 + $0x518] sm:$0xff]  ;;  %v1090_v5 = vld [vmem:[#allocation9 + $0x500] sm:$0xff] }
 0x1dd   : > { %1278 = vmatprep.subr.mxu1 %v1087_v4  ;;  %v1091_v4 = vld [vmem:[#allocation9 + $0x508] sm:$0xff] }
 0x1de   : > { %1279 = vmatpush1.msra.mxu1 %v1086_v6  ;;  %v928_v6 = vld [vmem:[#allocation2 + $0x20] sm:$0xff] }
 0x1df   : > { %1280 = vmatprep.subr.mxu1 %v1085_v7  ;;  %v1390_v7 = vld [vmem:[#allocation11 + $0xf8] sm:$0xff] }
 0x1e0   : > { %1281 = vmatpush1.msra.mxu1 %v1084_v8  ;;  %v1374_v8 = vld [vmem:[#allocation11 + $0x78] sm:$0xff]  ;;  %1770 = vmatprep.subr.mxu0 %v1390_v7 }
 0x1e1   : > { %1282 = vmatprep.subr.mxu1 %v1083_v9  ;;  %v1389_v9 = vld [vmem:[#allocation11 + $0xf0] sm:$0xff]  ;;  %1771 = vmatpush3.msra.mxu0 %v1374_v8 }
 0x1e2   : > { %1283 = vmatpush1.msra.mxu1 %v1082_v10  ;;  %v1373_v10 = vld [vmem:[#allocation11 + $0x70] sm:$0xff]  ;;  %1772 = vmatprep.subr.mxu0 %v1389_v9 }
 0x1e3   : > { %1284 = vmatprep.subr.mxu1 %v1081_v11  ;;  %v1388_v11 = vld [vmem:[#allocation11 + $0xe8] sm:$0xff]  ;;  %1773 = vmatpush3.msra.mxu0 %v1373_v10 }
 0x1e4   : > { %1285 = vmatpush1.msra.mxu1 %v1080_v12  ;;  %v1372_v12 = vld [vmem:[#allocation11 + $0x68] sm:$0xff]  ;;  %1774 = vmatprep.subr.mxu0 %v1388_v11 }
 0x1e5   : > { %1286 = vmatprep.subr.mxu1 %v1079_v13  ;;  %v1387_v13 = vld [vmem:[#allocation11 + $0xe0] sm:$0xff]  ;;  %1775 = vmatpush3.msra.mxu0 %v1372_v12 }
 0x1e6   : > { %1287 = vmatpush1.msra.mxu1 %v1078_v14  ;;  %v1371_v14 = vld [vmem:[#allocation11 + $0x60] sm:$0xff]  ;;  %1776 = vmatprep.subr.mxu0 %v1387_v13 }
 0x1e7   : > { %1288 = vmatprep.subr.mxu1 %v1077_v15  ;;  %v1386_v15 = vld [vmem:[#allocation11 + $0xd8] sm:$0xff]  ;;  %1777 = vmatpush3.msra.mxu0 %v1371_v14 }
 0x1e8   : > { %1289 = vmatpush1.msra.mxu1 %v1076_v16  ;;  %v1370_v16 = vld [vmem:[#allocation11 + $0x58] sm:$0xff]  ;;  %1778 = vmatprep.subr.mxu0 %v1386_v15 }
 0x1e9   : > { %1290 = vmatprep.subr.mxu1 %v1075_v17  ;;  %v1385_v17 = vld [vmem:[#allocation11 + $0xd0] sm:$0xff]  ;;  %1779 = vmatpush3.msra.mxu0 %v1370_v16 }
 0x1ea   : > { %1291 = vmatpush1.msra.mxu1 %v1074_v18  ;;  %v1384_v18 = vld [vmem:[#allocation11 + $0xc8] sm:$0xff]  ;;  %1780 = vmatprep.subr.mxu0 %v1385_v17 }
 0x1eb   : > { %1292 = vmatprep.subr.mxu1 %v1073_v19  ;;  %v1368_v19 = vld [vmem:[#allocation11 + $0x48] sm:$0xff] }
 0x1ec   : > { %1293 = vmatpush1.msra.mxu1 %v1072_v20  ;;  %v1383_v20 = vld [vmem:[#allocation11 + $0xc0] sm:$0xff] }
 0x1ed   : > { %1294 = vmatprep.subr.mxu1 %v1071_v21  ;;  %v1367_v21 = vld [vmem:[#allocation11 + $0x40] sm:$0xff] }
 0x1ee   : > { %1295 = vmatpush1.msra.mxu1 %v1070_v22  ;;  %v1382_v22 = vld [vmem:[#allocation11 + $0xb8] sm:$0xff] }
 0x1ef   : > { %1296 = vmatprep.subr.mxu1 %v1069_v23  ;;  %v1366_v23 = vld [vmem:[#allocation11 + $0x38] sm:$0xff] }
 0x1f0   : > { %1297 = vmatpush1.msra.mxu1 %v1068_v24  ;;  %v1381_v24 = vld [vmem:[#allocation11 + $0xb0] sm:$0xff] }
 0x1f1   : > { %1298 = vmatprep.subr.mxu1 %v1067_v25  ;;  %v1365_v25 = vld [vmem:[#allocation11 + $0x30] sm:$0xff] }
 0x1f2   : > { %1299 = vmatpush1.msra.mxu1 %v1066_v26  ;;  %v1380_v26 = vld [vmem:[#allocation11 + $0xa8] sm:$0xff] }
 0x1f3   : > { %1300 = vmatprep.subr.mxu1 %v1065_v28  ;;  %v1364_v28 = vld [vmem:[#allocation11 + $0x28] sm:$0xff] }
 0x1f4   : > { %1301 = vmatpush1.msra.mxu1 %v1064_v29  ;;  %v1379_v29 = vld [vmem:[#allocation11 + $0xa0] sm:$0xff] }
 0x1f5   : > { %1302 = vmatprep.subr.mxu1 %v1063_v30  ;;  %v1363_v30 = vld [vmem:[#allocation11 + $0x20] sm:$0xff] }
 0x1f6   : > { %1303 = vmatpush1.msra.mxu1 %v1062_v31  ;;  %v1378_v31 = vld [vmem:[#allocation11 + $0x98] sm:$0xff] }
 0x1f7   : > { %1304 = vmatprep.subr.mxu1 %v1061_v32  ;;  %v1362_v32 = vld [vmem:[#allocation11 + $0x18] sm:$0xff] }
 0x1f8   : > { %1305 = vmatpush1.msra.mxu1 %v1060_v33  ;;  %v1377_v33 = vld [vmem:[#allocation11 + $0x90] sm:$0xff] }
 0x1f9   : > { %1306 = vmatprep.subr.mxu1 %v1059_v35  ;;  %v1361_v35 = vld [vmem:[#allocation11 + $0x10] sm:$0xff] }
 0x1fa   : > { %1307 = vmatpush1.msra.mxu1 %v1058_v36  ;;  %v1376_v36 = vld [vmem:[#allocation11 + $0x88] sm:$0xff] }
 0x1fb   : > { %1308 = vmatprep.subr.mxu1 %v1121_v37  ;;  %v1360_v37 = vld [vmem:[#allocation11 + $0x8] sm:$0xff] }
 0x1fc   : > { %1309 = vmatpush2.msra.mxu1 %v1120_v38  ;;  %v1375_v38 = vld [vmem:[#allocation11 + $0x80] sm:$0xff] }
 0x1fd   : > { %1310 = vmatprep.subr.mxu1 %v1119_v39  ;;  %v1359_v39 = vld [vmem:[#allocation11] sm:$0xff] }
 0x1fe   : > { %1311 = vmatpush2.msra.mxu1 %v1118_v40  ;;  %v1493_v40 = vld [vmem:[#allocation12 + $0xf8] sm:$0xff] }
 0x1ff   : > { %1312 = vmatprep.subr.mxu1 %v1117_v41  ;;  %v1492_v41 = vld [vmem:[#allocation12 + $0xf0] sm:$0xff] }
 0x200   : > { %1313 = vmatpush2.msra.mxu1 %v1116_v42  ;;  %v1491_v42 = vld [vmem:[#allocation12 + $0xe8] sm:$0xff] }
 0x201   : > { %1314 = vmatprep.subr.mxu1 %v1115_v43  ;;  %v1490_v43 = vld [vmem:[#allocation12 + $0xe0] sm:$0xff] }
 0x202   : > { %1315 = vmatpush2.msra.mxu1 %v1114_v44  ;;  %v1489_v44 = vld [vmem:[#allocation12 + $0xd8] sm:$0xff] }
 0x203   : > { %1316 = vmatprep.subr.mxu1 %v1113_v1  ;;  %v1488_v1 = vld [vmem:[#allocation12 + $0xd0] sm:$0xff] }
 0x204   : > { %1317 = vmatpush2.msra.mxu1 %v1112_v45  ;;  %v1487_v45 = vld [vmem:[#allocation12 + $0xc8] sm:$0xff] }
 0x205   : > { %1318 = vmatprep.subr.mxu1 %v1111_v46  ;;  %v1486_v46 = vld [vmem:[#allocation12 + $0xc0] sm:$0xff] }
 0x206   : > { %1319 = vmatpush2.msra.mxu1 %v1110_v34  ;;  %v1485_v34 = vld [vmem:[#allocation12 + $0xb8] sm:$0xff] }
 0x207   : > { %1320 = vmatprep.subr.mxu1 %v1109_v47  ;;  %v1484_v47 = vld [vmem:[#allocation12 + $0xb0] sm:$0xff] }
 0x208   : > { %1321 = vmatpush2.msra.mxu1 %v1108_v48  ;;  %v1483_v48 = vld [vmem:[#allocation12 + $0xa8] sm:$0xff] }
 0x209   : > { %1322 = vmatprep.subr.mxu1 %v1107_v49  ;;  %v1482_v49 = vld [vmem:[#allocation12 + $0xa0] sm:$0xff] }
 0x20a   : > { %1323 = vmatpush2.msra.mxu1 %v1106_v50  ;;  %v1481_v50 = vld [vmem:[#allocation12 + $0x98] sm:$0xff] }
 0x20b   : > { %1324 = vmatprep.subr.mxu1 %v1105_v51  ;;  %v1480_v51 = vld [vmem:[#allocation12 + $0x90] sm:$0xff] }
 0x20c   : > { %1325 = vmatpush2.msra.mxu1 %v1104_v52  ;;  %v1479_v52 = vld [vmem:[#allocation12 + $0x88] sm:$0xff] }
 0x20d   : > { %1326 = vmatprep.subr.mxu1 %v1103_v53  ;;  %v1478_v53 = vld [vmem:[#allocation12 + $0x80] sm:$0xff] }
 0x20e   : > { %1327 = vmatpush2.msra.mxu1 %v1102_v54  ;;  %v1477_v54 = vld [vmem:[#allocation12 + $0x78] sm:$0xff] }
 0x20f   : > { %1328 = vmatprep.subr.mxu1 %v1101_v55  ;;  %v1476_v55 = vld [vmem:[#allocation12 + $0x70] sm:$0xff] }
 0x210   : > { %1329 = vmatpush2.msra.mxu1 %v1100_v56  ;;  %v1475_v56 = vld [vmem:[#allocation12 + $0x68] sm:$0xff] }
 0x211   : > { %1330 = vmatprep.subr.mxu1 %v1099_v57  ;;  %v1474_v57 = vld [vmem:[#allocation12 + $0x60] sm:$0xff] }
 0x212   : > { %1331 = vmatpush2.msra.mxu1 %v1098_v58  ;;  %v1473_v58 = vld [vmem:[#allocation12 + $0x58] sm:$0xff] }
 0x213   : > { %1332 = vmatprep.subr.mxu1 %v1097_v59  ;;  %v1472_v59 = vld [vmem:[#allocation12 + $0x50] sm:$0xff] }
 0x214   : > { %1333 = vmatpush2.msra.mxu1 %v1096_v60  ;;  %v1471_v60 = vld [vmem:[#allocation12 + $0x48] sm:$0xff] }
 0x215   : > { %1334 = vmatprep.subr.mxu1 %v1095_v61  ;;  %v1470_v61 = vld [vmem:[#allocation12 + $0x40] sm:$0xff] }
 0x216   : > { %1335 = vmatpush2.msra.mxu1 %v1094_v62  ;;  %v1469_v62 = vld [vmem:[#allocation12 + $0x38] sm:$0xff] }
 0x217   : > { %1336 = vmatprep.subr.mxu1 %v1093_v63  ;;  %v1122_v63 = vld [vmem:[%s2509_s6] sm:$0x3] }
 0x218   : > { %1337 = vmatpush2.msra.mxu1 %v1092_v3 }
 0x219   : > { %1338 = vmatprep.subr.mxu1 %v1091_v4  ;;  %v1127_v4 = vrot.slane %v1122_v63, %v2419_v27 }
 0x21a   : > { %1339 = vmatpush2.msra.mxu1 %v1090_v5  ;;  %v1131_v5 = vrot.slane %v1122_v63, %v2421_v0 }
 0x21b   : > { %1341 = vmatmul.mubr.f32.vlgmr.msra.gmra.mxu1 %v928_v6  ;;  %1494 = vmatprep.subr.mxu1 %v1493_v40 }
 0x21c   : > { %1558 = vmatprep.mubr.f32.mxu1 %v2169_v2  ;;  %v1369_v2 = vld [vmem:[#allocation11 + $0x50] sm:$0xff]  ;;  %1495 = vmatpush1.msra.mxu1 %v1492_v41 }
 0x21d   : > { %1781 = vmatpush3.msra.mxu0 %v1369_v2  ;;  %1496 = vmatprep.subr.mxu1 %v1491_v42 }
 0x21e   : > { %1782 = vmatprep.subr.mxu0 %v1384_v18  ;;  %1497 = vmatpush1.msra.mxu1 %v1490_v43 }
 0x21f   : > { %1783 = vmatpush3.msra.mxu0 %v1368_v19  ;;  %1498 = vmatprep.subr.mxu1 %v1489_v44 }
 0x220   : > { %1784 = vmatprep.subr.mxu0 %v1383_v20  ;;  %1499 = vmatpush1.msra.mxu1 %v1488_v1 }
 0x221   : > { %1785 = vmatpush3.msra.mxu0 %v1367_v21  ;;  %1500 = vmatprep.subr.mxu1 %v1487_v45 }
 0x222   : > { %1786 = vmatprep.subr.mxu0 %v1382_v22  ;;  %1501 = vmatpush1.msra.mxu1 %v1486_v46 }
 0x223   : > { %1787 = vmatpush3.msra.mxu0 %v1366_v23  ;;  %1502 = vmatprep.subr.mxu1 %v1485_v34 }
 0x224   : > { %1788 = vmatprep.subr.mxu0 %v1381_v24  ;;  %1503 = vmatpush1.msra.mxu1 %v1484_v47 }
 0x225   : > { %1789 = vmatpush3.msra.mxu0 %v1365_v25  ;;  %1504 = vmatprep.subr.mxu1 %v1483_v48 }
 0x226   : > { %1790 = vmatprep.subr.mxu0 %v1380_v26  ;;  %1505 = vmatpush1.msra.mxu1 %v1482_v49  ;;  %v1587_v49 = vld [vmem:[%s2389_s7] sm:$0xff] }
 0x227   : > { %1791 = vmatpush3.msra.mxu0 %v1364_v28  ;;  %1506 = vmatprep.subr.mxu1 %v1481_v50  ;;  %v1468_v28 = vld [vmem:[#allocation12 + $0x30] sm:$0xff] }
 0x228   : > { %1792 = vmatprep.subr.mxu0 %v1379_v29  ;;  %1507 = vmatpush1.msra.mxu1 %v1480_v51  ;;  %v1467_v29 = vld [vmem:[#allocation12 + $0x28] sm:$0xff] }
 0x229   : > { %1793 = vmatpush3.msra.mxu0 %v1363_v30  ;;  %1508 = vmatprep.subr.mxu1 %v1479_v52  ;;  %v1466_v30 = vld [vmem:[#allocation12 + $0x20] sm:$0xff] }
 0x22a   : > { %1794 = vmatprep.subr.mxu0 %v1378_v31  ;;  %1509 = vmatpush1.msra.mxu1 %v1478_v53  ;;  %v1465_v31 = vld [vmem:[#allocation12 + $0x18] sm:$0xff] }
 0x22b   : > { %1795 = vmatpush3.msra.mxu0 %v1362_v32  ;;  %1510 = vmatprep.subr.mxu1 %v1477_v54  ;;  %v1464_v32 = vld [vmem:[#allocation12 + $0x10] sm:$0xff] }
 0x22c   : > { %1796 = vmatprep.subr.mxu0 %v1377_v33  ;;  %1511 = vmatpush1.msra.mxu1 %v1476_v55  ;;  %v1463_v33 = vld [vmem:[#allocation12 + $0x8] sm:$0xff] }
 0x22d   : > { %1797 = vmatpush3.msra.mxu0 %v1361_v35  ;;  %1512 = vmatprep.subr.mxu1 %v1475_v56  ;;  %v1462_v35 = vld [vmem:[#allocation12] sm:$0xff] }
 0x22e   : > { %1798 = vmatprep.subr.mxu0 %v1376_v36  ;;  %1513 = vmatpush1.msra.mxu1 %v1474_v57  ;;  %v1588_v52 = vld [vmem:[%s2389_s7 + $0x8] sm:$0xff]  ;;  %s2081_s7 = scalar_lea.vmem %s1623_s17, 256 }
 0x22f   : > { %1799 = vmatpush3.msra.mxu0 %v1360_v37  ;;  %1514 = vmatprep.subr.mxu1 %v1473_v58  ;;  %p2082_p8 = scmp.ne.s32.totalorder %s1623_s17, %s2081_s7  ;;  %p2089_p9 = scmp.lt.s32.totalorder %s2087_s3, %s2081_s7 }
 0x230   : > { %1800 = vmatprep.subr.mxu0 %v1375_v38  ;;  %1515 = vmatpush1.msra.mxu1 %v1472_v59 }
 0x231   : > { %1801 = vmatpush3.msra.mxu0 %v1359_v39  ;;  %1516 = vmatprep.subr.mxu1 %v1471_v60  ;;  %p2083_p13 = pnand %p2082_p8, %p2542_p10  ;;  %p2090_p11 = por %p2089_p9, %p2088_p5 }
 0x232   : > { %1517 = vmatpush1.msra.mxu1 %v1470_v61 }
 0x233   : > { %1518 = vmatprep.subr.mxu1 %v1469_v62  ;;  %p2084_p0 = pneg %p2083_p13 }
 0x234   : > { %1519 = vmatpush1.msra.mxu1 %v1468_v28 }
 0x235   : > { %1520 = vmatprep.subr.mxu1 %v1467_v29  ;;  %p2091_p1 = pnand %p2090_p11, %p2084_p0 }
 0x236   : > { %1521 = vmatpush1.msra.mxu1 %v1466_v30 }
 0x237   : > { %1522 = vmatprep.subr.mxu1 %v1465_v31 }
 0x238   : > { %1523 = vmatpush1.msra.mxu1 %v1464_v32 }
 0x239   : > { %1524 = vmatprep.subr.mxu1 %v1463_v33 }
 0x23a   : > { %1525 = vmatpush1.msra.mxu1 %v1462_v35 }
 0x291   : > { %v1271_v8 = vpop.f32.mrf.mxu0 }
 0x293   : > { %v1273_v11 = vpop.f32.mrf.mxu0 }
 0x29b   : > { %v1200_v3 = vpop.f32.mrf.mxu1 }
 0x29c   : > { %v1201_v7 = vadd.f32 %v1200_v3, %v1127_v4 }
 0x29d   : > { %v1202_v6 = vpop.f32.mrf.mxu1 }
 0x29e   : > { %v1203_v9 = vadd.f32 %v1202_v6, %v1131_v5  ;;  %v1272_v10 = vadd.f32 %v1271_v8, %v1201_v7 }
 0x2a0   : > { %v1274_v14 = vadd.f32 %v1273_v11, %v1203_v9 }
 0x2db   : > { %v1342_v12 = vpop.f32.mrf.mxu1 }
 0x2dc   : > { %v1343_v13 = vadd.f32 %v1342_v12, %v1272_v10 }
 0x2dd   : > { %v1344_v15 = vpop.f32.mrf.mxu1 }
 0x2de   : > { %v1347_v16 = vrot.slane %v1343_v13, 4  ;;  %v1345_v17 = vadd.f32 %v1344_v15, %v1274_v14 }
 0x2e0   : > { %v1348_v2 = vadd.f32 %v1347_v16, %v1343_v13  ;;  %v1353_v18 = vrot.slane %v1345_v17, 4 }
 0x2e2   : > { %v1349_v19 = vrot.slane %v1348_v2, 2  ;;  %v1354_v20 = vadd.f32 %v1353_v18, %v1345_v17 }
 0x2e4   : > { %v1350_v21 = vadd.f32 %v1349_v19, %v1348_v2  ;;  %v1355_v22 = vrot.slane %v1354_v20, 2 }
 0x2e6   : > { %v1356_v23 = vadd.f32 %v1355_v22, %v1354_v20  ;;  %v1351_v0 = vrot.slane %v1350_v21, 1 }
 0x2e8   : > { %v1357_v24 = vrot.slane %v1356_v23, 1  ;;  %v1352_v26 = vadd.f32 %v1351_v0, %v1350_v21 }
 0x2ea   : > { %v1358_v25 = vadd.f32 %v1357_v24, %v1356_v23 }
 0x2ec   : > { %1455 = vmatprep.mubr.f32.mxu0 %v1358_v25 }
 0x2ed   : > { %1456 = vmatmul.mubr.f32.vlgmr.msra.gmra.mxu0 %v1352_v26 }
 0x3ad   : > { %v1802_v36 = vpop.f32.mrf.mxu0 }
 0x3af   : > { %v1803_v37 = vpop.f32.mrf.mxu0 }
 0x3b0   : > { %v1804_v38 = vadd.f32 %v1803_v37, %v1802_v36 }
 0x3b2   : > { %v1461_v39 = vmax.f32 %v1804_v38, 0.0 }
 0x3b4   : > { %1559 = vmatmul.mubr.f32.vlgmr.msra.gmra.mxu1 %v1461_v39 }
 0x474   : > { %v1560_v40 = vpop.f32.mrf.mxu1 }
 0x475   : > { %v1759_v41 = vmul.f32 -1.442695, %v1560_v40 }
 0x476   : > { %v1562_v42 = vpop.f32.mrf.mxu1 }
 0x477   : > { %1907 = vpow2.f32 %v1759_v41  ;;  %v1760_v43 = vmul.f32 -1.442695, %v1562_v42 }
 0x479   : > { %1909 = vpow2.f32 %v1760_v43 }
 0x484   : > { %v1908_v44 = vpop.eup %1907 }
 0x485   : > { %v1571_v1 = vadd.f32 1.0, %v1908_v44 }
 0x486   : > { %v1910_v45 = vpop.eup %1909 }
 0x487   : > { %1911 = vrcp.f32 %v1571_v1  ;;  %v1572_v46 = vadd.f32 1.0, %v1910_v45 }
 0x489   : > { %1913 = vrcp.f32 %v1572_v46 }
 0x494   : > { %v1912_v34 = vpop.eup %1911 }
 0x495   : > { %v1580_v47 = vrot.slane %v1912_v34, %v2419_v27 }
 0x496   : > { %v1914_v48 = vpop.eup %1913 }
 0x497   : > { %v1584_v50 = vrot.slane %v1914_v48, %v2419_v27  ;;  %v1585_v51 = vmul.f32 %v1580_v47, %v1343_v13 }
 0x499   : > { %v1586_v53 = vmul.f32 %v1584_v50, %v1345_v17  ;;  %v1589_v54 = vadd.f32 %v1587_v49, %v1585_v51 }
 0x49b   : > { %v1590_v55 = vadd.f32 %v1588_v52, %v1586_v53  ;;  %v1761_v56 = vmul.f32 -1.442695, %v1589_v54 }
 0x49d   : > { %1915 = vpow2.f32 %v1761_v56  ;;  %v1762_v57 = vmul.f32 -1.442695, %v1590_v55 }
 0x49f   : > { %1917 = vpow2.f32 %v1762_v57 }
 0x4aa   : > { %v1916_v58 = vpop.eup %1915 }
 0x4ab   : > { %v1597_v59 = vadd.f32 1.0, %v1916_v58 }
 0x4ac   : > { %v1918_v60 = vpop.eup %1917 }
 0x4ad   : > { %v1598_v61 = vadd.f32 1.0, %v1918_v60  ;;  %1919 = vrcp.f32 %v1597_v59 }
 0x4af   : > { %1921 = vrcp.f32 %v1598_v61 }
 0x4ba   : > { %v1920_v27 = vpop.eup %1919 }
 0x4bb   : > { %v1603_v62 = vmul.f32 %v1920_v27, %v1587_v49 }
 0x4bc   : > { %v1922_v63 = vpop.eup %1921 }
 0x4bd   : > { %v1604_v3 = vmul.f32 %v1922_v63, %v1588_v52  ;;  %1605 = vst [vmem:[%s419_s14] sm:$0xff] %v1603_v62 }
 0x4bf   : > { %1606 = vst [vmem:[%s419_s14 + $0x8] sm:$0xff] %v1604_v3 }
 0x4c0   : > { %2094 = shalt.err (!%p2091_p1)
}
 0x4c1   : > { %s2095_s26 = scalar_lea.hbm %s1620_s28, 256  ;;  %s2099_s23 = scalar_lea.hbm %s2512_s9, 512 }
 0x4c2   : > { %p2096_p3 = scmp.ne.s32.totalorder %s1620_s28, %s2095_s26  ;;  %p2100_p6 = scmp.lt.s32.totalorder %s1620_s28, %s2512_s9 }
 0x4c3   : > { %p2101_p2 = scmp.lt.s32.totalorder %s2099_s23, %s2095_s26 }
 0x4c4   : > { %p2097_p4 = pnand %p2096_p3, %p2542_p10 }
 0x4c5   : > { %p2102_p7 = por %p2101_p2, %p2100_p6 }
 0x4c6   : > { %p2098_p12 = pneg %p2097_p4 }
 0x4c8   : > { %p2103_p8 = pnand %p2102_p7, %p2098_p12 }
 0x4ca   : > { %2106 = shalt.err (!%p2103_p8)
}
 0x4cb   : > { %1827 = dma.vmem_to_hbm [thread:$0]  (%p2542_p10), %s1623_s17, 256, %s1620_s28, %s1608_s5  }
 0x4cc PF: > { %s1634_s13 = sand.u32 1, %s2145_s30   ;;  %p2543_p13 = scmp.ne.s32.totalorder %s2530_s29, 0 }
 0x4cd   : > { %p2544_p0 = scmp.ge.s32.totalorder %s2157_s12, 2  ;;  %s1635_s14 = scalar_lea.sflag [#allocation5], %s1634_s13 }
 0x4cf   : > { %p1850_p5 = pnand %p2544_p0, %p2543_p13 }
 0x4d1   : > { %p1851_p9 = pneg %p1850_p5 }
 0x4d3   : > { %2140 = dma.done.wait (%p1851_p9), %s1635_s14, 256  }
 0x4d4   : > { %2142 = vsyncadd (%p1851_p9), %s1635_s14, 4294967040  ;;  %p25_p11 = scmp.ge.s32.totalorder %s2326_s22, 4   ;;  %s2545_s30 = smov %s2149_s10 }
 0x4d5   : > { %s2546_s10 = smov %s2153_s11  ;;  %s2547_s11 = smov %s2338_s25 }
 0x4d6   : > { %s2548_s12 = smov %s2326_s22  ;;  %27 = sbr.rel (!%p25_p11) target bundleno = 13 (0xd), region = 122 }
 0x4db   :  { %1640 = vsyncpa [#allocation4], 1 }
 0x4dc   :  { %1642 = vsyncpa [#allocation4 + $0x1], 1 }
 0x4dd   :  { %1643 = vsyncpa [#allocation7], 1 }
 0x4de   :  { %1644 = vsyncpa [#allocation10], 1 }
 0x4df   :  { %1645 = vsyncpa [#allocation13], 1 }
 0x4e0   :  { %1646 = vsyncpa [#allocation5], 1 }
 0x4e1   :  { %1648 = vsyncpa [#allocation5 + $0x1], 1 }

</bundles_post_ra>
